<compile_context>
chip_gen: v5e
topology: v5e:2x2
jax: 0.10.0
libtpu: 0.0.40
codegen_flags: <defaults>
</compile_context>

<pallas_src>
import jax
import jax.numpy as jnp
from jax import lax
from jax.experimental import pallas as pl
from jax.experimental.pallas import tpu as pltpu


# -------------------------- Pallas kernel --------------------------

def lstmfe_kernel(xp_ref,    # (T*B, 2I) bf16, time-major; row block t holds [x[t] | x[T-1-t]]
                  wih_ref,   # (2I, 8H)  bf16, gate-interleaved input projection
                  b_ref,     # (1, 8H)   f32, pre-summed b_ih + b_hh, gate-interleaved
                  whh_ref,   # (2H, 8H)  bf16, block-diagonal recurrent weight acting on [h_f | h_r]
                  w1p_ref,   # (T, 2H, H) bf16, per-step linear1 blocks
                  b1_ref,    # (1, H)    f32
                  w2_ref,    # (H, 2)    f32
                  b2_ref,    # (1, 2)    f32
                  out_ref):  # (B, 2)    f32
    H2 = whh_ref.shape[0]            # 2H (both directions stacked)
    B = out_ref.shape[0]
    T = xp_ref.shape[0] // B

    whh = whh_ref[...]

    # Hoisted input projection for both directions and all timesteps (off the critical chain):
    # one (T*B, 2I) @ (2I, 8H) matmul + one bias broadcast.
    gx = jnp.dot(xp_ref[...], wih_ref[...], preferred_element_type=jnp.float32) + b_ref[...]

    h = jnp.zeros((B, H2), jnp.float32)     # [h_f | h_r]
    c = jnp.zeros((B, H2), jnp.float32)     # [c_f | c_r]
    z1 = jnp.zeros((B, b1_ref.shape[1]), jnp.float32)

    # Fully unrolled recurrence (T=8); only h @ whh sits on the serial dependency chain.
    for t in range(T):
        hb = h.astype(jnp.bfloat16)
        g = gx[t * B:(t + 1) * B, :] + jnp.dot(hb, whh,
                                               preferred_element_type=jnp.float32)  # 1 MXU push
        s = jax.nn.sigmoid(g)               # one full-width sigmoid; tanh(z) = 2*sigmoid(2z) - 1
        i = s[:, 0 * H2:1 * H2]
        f = s[:, 1 * H2:2 * H2]
        p = 2.0 * s[:, 2 * H2:3 * H2] - 1.0
        o = s[:, 3 * H2:4 * H2]
        c = f * c + i * p
        h = o * jnp.tanh(c)                 # both directions in one EUP push
        # Fused linear1 accumulation: off the h->h chain, hides in MXU slack.
        z1 = z1 + jnp.dot(h.astype(jnp.bfloat16), w1p_ref[t],
                          preferred_element_type=jnp.float32)

    z1 = jnp.maximum(z1 + b1_ref[...], 0.0)
    # TODO(synk): dropout implemented as identity (eval-mode); training parity would need
    #             pltpu.prng_seed + pltpu.prng_random_bits masking plus 1/(1-p) scaling.
    z2 = jnp.dot(z1, w2_ref[...], preferred_element_type=jnp.float32) + b2_ref[...]
    m = jnp.max(z2, axis=1, keepdims=True)
    e = z2 - m
    out_ref[...] = e - jnp.log(jnp.sum(jnp.exp(e), axis=1, keepdims=True))


# -------------------------- parameter fusion (run once) --------------------------

def prepare_fused_params(params):
    """Fold canonical params into the fused, direction-interleaved layouts the kernel consumes."""
    H = params["whh_f"].shape[0]

    def interleave(wf, wr):
        # [i|f|g|o] x 2 -> [i_f i_r | f_f f_r | g_f g_r | o_f o_r]; g blocks scaled by 2 so a
        # single full-width sigmoid serves all gates (tanh(z) = 2*sigmoid(2z) - 1).
        blocks = []
        for k in range(4):
            sf = wf[..., k * H:(k + 1) * H]
            sr = wr[..., k * H:(k + 1) * H]
            if k == 2:
                sf, sr = 2.0 * sf, 2.0 * sr
            blocks += [sf, sr]
        return jnp.concatenate(blocks, axis=-1)

    zI = jnp.zeros_like(params["wih_f"])
    zH = jnp.zeros_like(params["whh_f"])
    # Paired-input projection: rows 0:I act on x[t] (forward gates), rows I:2I on x[T-1-t] (reverse).
    wih = jnp.concatenate([interleave(params["wih_f"], zI),
                           interleave(zI, params["wih_r"])], axis=0)          # (2I, 8H)
    # Recurrent weight on h = [h_f | h_r]: block-diagonal per direction, gate-interleaved columns.
    whh = jnp.concatenate([interleave(params["whh_f"], zH),
                           interleave(zH, params["whh_r"])], axis=0)          # (2H, 8H)
    b = interleave(params["b_f"], params["b_r"])                              # (1, 8H)
    # Per-step linear1 blocks matching the carried [h_f(time t) | h_r(time T-1-t)] state.
    w1 = params["w1"]                                                         # (T, 2H, H)
    w1p = jnp.concatenate([w1[:, :H, :], w1[::-1, H:, :]], axis=1)            # (T, 2H, H)
    return (wih.astype(jnp.bfloat16), b, whh.astype(jnp.bfloat16),
            w1p.astype(jnp.bfloat16), params["b1"], params["w2"], params["b2"])


# -------------------------- jitted wrapper --------------------------

@jax.jit
def lstmfe_forward(x, fused):
    """x: (B, T, I) float32 (batch_first, like the PyTorch module). fused: prepare_fused_params()."""
    wih, b, whh, w1p, b1, w2, b2 = fused
    B, T, I = x.shape
    x_tm = jnp.transpose(x, (1, 0, 2))                     # (T, B, I) time-major
    xp = jnp.concatenate([x_tm, x_tm[::-1]], axis=-1)      # (T, B, 2I): [x[t] | x[T-1-t]]
    xp = xp.reshape(T * B, 2 * I).astype(jnp.bfloat16)

    vmem = pl.BlockSpec(memory_space=pltpu.MemorySpace.VMEM)
    inputs = (xp, wih, b, whh, w1p, b1, w2, b2)
    return pl.pallas_call(
        lstmfe_kernel,
        out_shape=jax.ShapeDtypeStruct((B, 2), jnp.float32),
        in_specs=[vmem] * len(inputs),
        out_specs=vmem,
    )(*inputs)


# -------------------------- pure-JAX reference --------------------------

def lstmfe_reference(x, params):
    B, T, I = x.shape
    H = params["whh_f"].shape[0]

    def cell(carry, xt, wih, whh, b):
        h, c = carry
        g = xt @ wih + h @ whh + b
        i = jax.nn.sigmoid(g[:, :H])
        f = jax.nn.sigmoid(g[:, H:2 * H])
        gg = jnp.tanh(g[:, 2 * H:3 * H])
        o = jax.nn.sigmoid(g[:, 3 * H:])
        c = f * c + i * gg
        h = o * jnp.tanh(c)
        return (h, c), h

    h0 = (jnp.zeros((B, H), jnp.float32), jnp.zeros((B, H), jnp.float32))
    xs = jnp.transpose(x, (1, 0, 2))
    _, hs_f = lax.scan(lambda c, xt: cell(c, xt, params["wih_f"], params["whh_f"], params["b_f"]), h0, xs)
    _, hs_r = lax.scan(lambda c, xt: cell(c, xt, params["wih_r"], params["whh_r"], params["b_r"]), h0, xs[::-1])
    hs_r = hs_r[::-1]
    out = jnp.concatenate([hs_f, hs_r], axis=-1)            # (T, B, 2H)
    flat = jnp.transpose(out, (1, 0, 2)).reshape(B, T * 2 * H)
    w1_flat = params["w1"].reshape(T * 2 * H, H)
    z1 = jnp.maximum(flat @ w1_flat + params["b1"], 0.0)
    z2 = z1 @ params["w2"] + params["b2"]
    return jax.nn.log_softmax(z2, axis=1)


# -------------------------- deterministic params --------------------------

def init_params(key, input_size, hidden_size, seq_len):
    I, H, T = input_size, hidden_size, seq_len
    ks = jax.random.split(key, 12)
    u = lambda k, shape: jax.random.uniform(k, shape, jnp.float32, -0.1, 0.1)
    params = {
        # LSTM weights stored as (in, 4H), gate order i|f|g|o; biases pre-summed (b_ih + b_hh)
        "wih_f": u(ks[0], (I, 4 * H)),
        "whh_f": u(ks[1], (H, 4 * H)),
        "b_f":   u(ks[2], (1, 4 * H)),
        "wih_r": u(ks[3], (I, 4 * H)),
        "whh_r": u(ks[4], (H, 4 * H)),
        "b_r":   u(ks[5], (1, 4 * H)),
        # linear1: PyTorch weight (H, T*2H) -> transposed & reshaped to (T, 2H, H)
        "w1":    u(ks[6], (T, 2 * H, H)),
        "b1":    u(ks[7], (1, H)),
        # linear2: PyTorch weight (2, H) -> transposed to (H, 2)
        "w2":    u(ks[8], (H, 2)),
        "b2":    u(ks[9], (1, 2)),
    }
    return params


if __name__ == "__main__":
    B, T, I, H = 2, 8, 16, 32  # batch, max_seq_len, input_size, hidden_size
    key = jax.random.PRNGKey(0)
    kx, kp = jax.random.split(key)
    x = jax.random.normal(kx, (B, T, I), jnp.float32)
    params = init_params(kp, I, H, T)

    fused = prepare_fused_params(params)   # prepared once; weights are static
    out = jax.block_until_ready(lstmfe_forward(x, fused))

    with jax.default_matmul_precision("highest"):
        ref = jax.block_until_ready(lstmfe_reference(x, params))

    assert out.shape == (B, 2), out.shape
    assert jnp.allclose(out, ref, atol=2e-2, rtol=2e-2), (out, ref)
    print("KERNEL_OK")
</pallas_src>

<mosaic_0001>
module attributes {stable_mosaic.version = 11 : i64} {
  func.func @lstmfe_kernel(%arg0: memref<16x32xbf16, #tpu.memory_space<vmem>>, %arg1: memref<32x256xbf16, #tpu.memory_space<vmem>>, %arg2: memref<1x256xf32, #tpu.memory_space<vmem>>, %arg3: memref<64x256xbf16, #tpu.memory_space<vmem>>, %arg4: memref<8x64x32xbf16, #tpu.memory_space<vmem>>, %arg5: memref<1x32xf32, #tpu.memory_space<vmem>>, %arg6: memref<32x2xf32, #tpu.memory_space<vmem>>, %arg7: memref<1x2xf32, #tpu.memory_space<vmem>>, %arg8: memref<2x2xf32, #tpu.memory_space<vmem>>) attributes {dimension_semantics = [], scalar_prefetch = 0 : i64, scratch_operands = 0 : i64, tpu.core_type = #tpu.core_type<tc>} {
    %c0 = arith.constant 0 : index
    %c0_0 = arith.constant 0 : index
    %0 = vector.load %arg3[%c0, %c0_0] : memref<64x256xbf16, #tpu.memory_space<vmem>>, vector<64x256xbf16>
    %c0_1 = arith.constant 0 : index
    %c0_2 = arith.constant 0 : index
    %1 = vector.load %arg0[%c0_1, %c0_2] : memref<16x32xbf16, #tpu.memory_space<vmem>>, vector<16x32xbf16>
    %c0_3 = arith.constant 0 : index
    %c0_4 = arith.constant 0 : index
    %2 = vector.load %arg1[%c0_3, %c0_4] : memref<32x256xbf16, #tpu.memory_space<vmem>>, vector<32x256xbf16>
    %cst = arith.constant dense<0.000000e+00> : vector<16x256xf32>
    %3 = tpu.matmul %1, %2, %cst {dimension_numbers = #tpu.dot_dimension_numbers<[1], [0], [0], [1], [0, 0, 1, 1], [], []>} : vector<16x32xbf16>, vector<32x256xbf16>, vector<16x256xf32> -> vector<16x256xf32>
    %c0_5 = arith.constant 0 : index
    %c0_6 = arith.constant 0 : index
    %4 = vector.load %arg2[%c0_5, %c0_6] : memref<1x256xf32, #tpu.memory_space<vmem>>, vector<1x256xf32>
    %5 = vector.broadcast %4 : vector<1x256xf32> to vector<16x256xf32>
    %6 = arith.addf %3, %5 : vector<16x256xf32>
    %cst_7 = arith.constant 0.000000e+00 : f32
    %7 = vector.broadcast %cst_7 : f32 to vector<2x64xf32>
    %cst_8 = arith.constant 0.000000e+00 : f32
    %8 = vector.broadcast %cst_8 : f32 to vector<2x64xf32>
    %cst_9 = arith.constant 0.000000e+00 : f32
    %9 = vector.broadcast %cst_9 : f32 to vector<2x32xf32>
    %10 = arith.truncf %7 : vector<2x64xf32> to vector<2x64xbf16>
    %11 = vector.extract_strided_slice %6 {offsets = [0, 0], sizes = [2, 256], strides = [1, 1]} : vector<16x256xf32> to vector<2x256xf32>
    %cst_10 = arith.constant dense<0.000000e+00> : vector<2x256xf32>
    %12 = tpu.matmul %10, %0, %cst_10 {dimension_numbers = #tpu.dot_dimension_numbers<[1], [0], [0], [1], [0, 0, 1, 1], [], []>} : vector<2x64xbf16>, vector<64x256xbf16>, vector<2x256xf32> -> vector<2x256xf32>
    %13 = arith.addf %11, %12 : vector<2x256xf32>
    %14 = arith.negf %13 : vector<2x256xf32>
    %15 = math.exp %14 : vector<2x256xf32>
    %cst_11 = arith.constant 1.000000e+00 : f32
    %16 = vector.broadcast %cst_11 : f32 to vector<2x256xf32>
    %17 = arith.addf %16, %15 : vector<2x256xf32>
    %18 = arith.divf %16, %17 : vector<2x256xf32>
    %19 = vector.extract_strided_slice %18 {offsets = [0, 0], sizes = [2, 64], strides = [1, 1]} : vector<2x256xf32> to vector<2x64xf32>
    %20 = vector.extract_strided_slice %18 {offsets = [0, 64], sizes = [2, 64], strides = [1, 1]} : vector<2x256xf32> to vector<2x64xf32>
    %21 = vector.extract_strided_slice %18 {offsets = [0, 128], sizes = [2, 64], strides = [1, 1]} : vector<2x256xf32> to vector<2x64xf32>
    %cst_12 = arith.constant 2.000000e+00 : f32
    %22 = vector.broadcast %cst_12 : f32 to vector<2x64xf32>
    %23 = arith.mulf %22, %21 : vector<2x64xf32>
    %cst_13 = arith.constant 1.000000e+00 : f32
    %24 = vector.broadcast %cst_13 : f32 to vector<2x64xf32>
    %25 = arith.subf %23, %24 : vector<2x64xf32>
    %26 = vector.extract_strided_slice %18 {offsets = [0, 192], sizes = [2, 64], strides = [1, 1]} : vector<2x256xf32> to vector<2x64xf32>
    %27 = arith.mulf %20, %8 : vector<2x64xf32>
    %28 = arith.mulf %19, %25 : vector<2x64xf32>
    %29 = arith.addf %27, %28 : vector<2x64xf32>
    %30 = math.tanh %29 : vector<2x64xf32>
    %31 = arith.mulf %26, %30 : vector<2x64xf32>
    %32 = arith.truncf %31 : vector<2x64xf32> to vector<2x64xbf16>
    %c0_14 = arith.constant 0 : index
    %c0_15 = arith.constant 0 : index
    %c0_16 = arith.constant 0 : index
    %33 = vector.load %arg4[%c0_14, %c0_15, %c0_16] : memref<8x64x32xbf16, #tpu.memory_space<vmem>>, vector<1x64x32xbf16>
    %34 = vector.shape_cast %33 : vector<1x64x32xbf16> to vector<64x32xbf16>
    %cst_17 = arith.constant dense<0.000000e+00> : vector<2x32xf32>
    %35 = tpu.matmul %32, %34, %cst_17 {dimension_numbers = #tpu.dot_dimension_numbers<[1], [0], [0], [1], [0, 0, 1, 1], [], []>} : vector<2x64xbf16>, vector<64x32xbf16>, vector<2x32xf32> -> vector<2x32xf32>
    %36 = arith.addf %9, %35 : vector<2x32xf32>
    %37 = arith.truncf %31 : vector<2x64xf32> to vector<2x64xbf16>
    %38 = vector.extract_strided_slice %6 {offsets = [2, 0], sizes = [2, 256], strides = [1, 1]} : vector<16x256xf32> to vector<2x256xf32>
    %cst_18 = arith.constant dense<0.000000e+00> : vector<2x256xf32>
    %39 = tpu.matmul %37, %0, %cst_18 {dimension_numbers = #tpu.dot_dimension_numbers<[1], [0], [0], [1], [0, 0, 1, 1], [], []>} : vector<2x64xbf16>, vector<64x256xbf16>, vector<2x256xf32> -> vector<2x256xf32>
    %40 = arith.addf %38, %39 : vector<2x256xf32>
    %41 = arith.negf %40 : vector<2x256xf32>
    %42 = math.exp %41 : vector<2x256xf32>
    %cst_19 = arith.constant 1.000000e+00 : f32
    %43 = vector.broadcast %cst_19 : f32 to vector<2x256xf32>
    %44 = arith.addf %43, %42 : vector<2x256xf32>
    %45 = arith.divf %43, %44 : vector<2x256xf32>
    %46 = vector.extract_strided_slice %45 {offsets = [0, 0], sizes = [2, 64], strides = [1, 1]} : vector<2x256xf32> to vector<2x64xf32>
    %47 = vector.extract_strided_slice %45 {offsets = [0, 64], sizes = [2, 64], strides = [1, 1]} : vector<2x256xf32> to vector<2x64xf32>
    %48 = vector.extract_strided_slice %45 {offsets = [0, 128], sizes = [2, 64], strides = [1, 1]} : vector<2x256xf32> to vector<2x64xf32>
    %cst_20 = arith.constant 2.000000e+00 : f32
    %49 = vector.broadcast %cst_20 : f32 to vector<2x64xf32>
    %50 = arith.mulf %49, %48 : vector<2x64xf32>
    %cst_21 = arith.constant 1.000000e+00 : f32
    %51 = vector.broadcast %cst_21 : f32 to vector<2x64xf32>
    %52 = arith.subf %50, %51 : vector<2x64xf32>
    %53 = vector.extract_strided_slice %45 {offsets = [0, 192], sizes = [2, 64], strides = [1, 1]} : vector<2x256xf32> to vector<2x64xf32>
    %54 = arith.mulf %47, %29 : vector<2x64xf32>
    %55 = arith.mulf %46, %52 : vector<2x64xf32>
    %56 = arith.addf %54, %55 : vector<2x64xf32>
    %57 = math.tanh %56 : vector<2x64xf32>
    %58 = arith.mulf %53, %57 : vector<2x64xf32>
    %59 = arith.truncf %58 : vector<2x64xf32> to vector<2x64xbf16>
    %c1 = arith.constant 1 : index
    %c0_22 = arith.constant 0 : index
    %c0_23 = arith.constant 0 : index
    %60 = vector.load %arg4[%c1, %c0_22, %c0_23] : memref<8x64x32xbf16, #tpu.memory_space<vmem>>, vector<1x64x32xbf16>
    %61 = vector.shape_cast %60 : vector<1x64x32xbf16> to vector<64x32xbf16>
    %cst_24 = arith.constant dense<0.000000e+00> : vector<2x32xf32>
    %62 = tpu.matmul %59, %61, %cst_24 {dimension_numbers = #tpu.dot_dimension_numbers<[1], [0], [0], [1], [0, 0, 1, 1], [], []>} : vector<2x64xbf16>, vector<64x32xbf16>, vector<2x32xf32> -> vector<2x32xf32>
    %63 = arith.addf %36, %62 : vector<2x32xf32>
    %64 = arith.truncf %58 : vector<2x64xf32> to vector<2x64xbf16>
    %65 = vector.extract_strided_slice %6 {offsets = [4, 0], sizes = [2, 256], strides = [1, 1]} : vector<16x256xf32> to vector<2x256xf32>
    %cst_25 = arith.constant dense<0.000000e+00> : vector<2x256xf32>
    %66 = tpu.matmul %64, %0, %cst_25 {dimension_numbers = #tpu.dot_dimension_numbers<[1], [0], [0], [1], [0, 0, 1, 1], [], []>} : vector<2x64xbf16>, vector<64x256xbf16>, vector<2x256xf32> -> vector<2x256xf32>
    %67 = arith.addf %65, %66 : vector<2x256xf32>
    %68 = arith.negf %67 : vector<2x256xf32>
    %69 = math.exp %68 : vector<2x256xf32>
    %cst_26 = arith.constant 1.000000e+00 : f32
    %70 = vector.broadcast %cst_26 : f32 to vector<2x256xf32>
    %71 = arith.addf %70, %69 : vector<2x256xf32>
    %72 = arith.divf %70, %71 : vector<2x256xf32>
    %73 = vector.extract_strided_slice %72 {offsets = [0, 0], sizes = [2, 64], strides = [1, 1]} : vector<2x256xf32> to vector<2x64xf32>
    %74 = vector.extract_strided_slice %72 {offsets = [0, 64], sizes = [2, 64], strides = [1, 1]} : vector<2x256xf32> to vector<2x64xf32>
    %75 = vector.extract_strided_slice %72 {offsets = [0, 128], sizes = [2, 64], strides = [1, 1]} : vector<2x256xf32> to vector<2x64xf32>
    %cst_27 = arith.constant 2.000000e+00 : f32
    %76 = vector.broadcast %cst_27 : f32 to vector<2x64xf32>
    %77 = arith.mulf %76, %75 : vector<2x64xf32>
    %cst_28 = arith.constant 1.000000e+00 : f32
    %78 = vector.broadcast %cst_28 : f32 to vector<2x64xf32>
    %79 = arith.subf %77, %78 : vector<2x64xf32>
    %80 = vector.extract_strided_slice %72 {offsets = [0, 192], sizes = [2, 64], strides = [1, 1]} : vector<2x256xf32> to vector<2x64xf32>
    %81 = arith.mulf %74, %56 : vector<2x64xf32>
    %82 = arith.mulf %73, %79 : vector<2x64xf32>
    %83 = arith.addf %81, %82 : vector<2x64xf32>
    %84 = math.tanh %83 : vector<2x64xf32>
    %85 = arith.mulf %80, %84 : vector<2x64xf32>
    %86 = arith.truncf %85 : vector<2x64xf32> to vector<2x64xbf16>
    %c2 = arith.constant 2 : index
    %c0_29 = arith.constant 0 : index
    %c0_30 = arith.constant 0 : index
    %87 = vector.load %arg4[%c2, %c0_29, %c0_30] : memref<8x64x32xbf16, #tpu.memory_space<vmem>>, vector<1x64x32xbf16>
    %88 = vector.shape_cast %87 : vector<1x64x32xbf16> to vector<64x32xbf16>
    %cst_31 = arith.constant dense<0.000000e+00> : vector<2x32xf32>
    %89 = tpu.matmul %86, %88, %cst_31 {dimension_numbers = #tpu.dot_dimension_numbers<[1], [0], [0], [1], [0, 0, 1, 1], [], []>} : vector<2x64xbf16>, vector<64x32xbf16>, vector<2x32xf32> -> vector<2x32xf32>
    %90 = arith.addf %63, %89 : vector<2x32xf32>
    %91 = arith.truncf %85 : vector<2x64xf32> to vector<2x64xbf16>
    %92 = vector.extract_strided_slice %6 {offsets = [6, 0], sizes = [2, 256], strides = [1, 1]} : vector<16x256xf32> to vector<2x256xf32>
    %cst_32 = arith.constant dense<0.000000e+00> : vector<2x256xf32>
    %93 = tpu.matmul %91, %0, %cst_32 {dimension_numbers = #tpu.dot_dimension_numbers<[1], [0], [0], [1], [0, 0, 1, 1], [], []>} : vector<2x64xbf16>, vector<64x256xbf16>, vector<2x256xf32> -> vector<2x256xf32>
    %94 = arith.addf %92, %93 : vector<2x256xf32>
    %95 = arith.negf %94 : vector<2x256xf32>
    %96 = math.exp %95 : vector<2x256xf32>
    %cst_33 = arith.constant 1.000000e+00 : f32
    %97 = vector.broadcast %cst_33 : f32 to vector<2x256xf32>
    %98 = arith.addf %97, %96 : vector<2x256xf32>
    %99 = arith.divf %97, %98 : vector<2x256xf32>
    %100 = vector.extract_strided_slice %99 {offsets = [0, 0], sizes = [2, 64], strides = [1, 1]} : vector<2x256xf32> to vector<2x64xf32>
    %101 = vector.extract_strided_slice %99 {offsets = [0, 64], sizes = [2, 64], strides = [1, 1]} : vector<2x256xf32> to vector<2x64xf32>
    %102 = vector.extract_strided_slice %99 {offsets = [0, 128], sizes = [2, 64], strides = [1, 1]} : vector<2x256xf32> to vector<2x64xf32>
    %cst_34 = arith.constant 2.000000e+00 : f32
    %103 = vector.broadcast %cst_34 : f32 to vector<2x64xf32>
    %104 = arith.mulf %103, %102 : vector<2x64xf32>
    %cst_35 = arith.constant 1.000000e+00 : f32
    %105 = vector.broadcast %cst_35 : f32 to vector<2x64xf32>
    %106 = arith.subf %104, %105 : vector<2x64xf32>
    %107 = vector.extract_strided_slice %99 {offsets = [0, 192], sizes = [2, 64], strides = [1, 1]} : vector<2x256xf32> to vector<2x64xf32>
    %108 = arith.mulf %101, %83 : vector<2x64xf32>
    %109 = arith.mulf %100, %106 : vector<2x64xf32>
    %110 = arith.addf %108, %109 : vector<2x64xf32>
    %111 = math.tanh %110 : vector<2x64xf32>
    %112 = arith.mulf %107, %111 : vector<2x64xf32>
    %113 = arith.truncf %112 : vector<2x64xf32> to vector<2x64xbf16>
    %c3 = arith.constant 3 : index
    %c0_36 = arith.constant 0 : index
    %c0_37 = arith.constant 0 : index
    %114 = vector.load %arg4[%c3, %c0_36, %c0_37] : memref<8x64x32xbf16, #tpu.memory_space<vmem>>, vector<1x64x32xbf16>
    %115 = vector.shape_cast %114 : vector<1x64x32xbf16> to vector<64x32xbf16>
    %cst_38 = arith.constant dense<0.000000e+00> : vector<2x32xf32>
    %116 = tpu.matmul %113, %115, %cst_38 {dimension_numbers = #tpu.dot_dimension_numbers<[1], [0], [0], [1], [0, 0, 1, 1], [], []>} : vector<2x64xbf16>, vector<64x32xbf16>, vector<2x32xf32> -> vector<2x32xf32>
    %117 = arith.addf %90, %116 : vector<2x32xf32>
    %118 = arith.truncf %112 : vector<2x64xf32> to vector<2x64xbf16>
    %119 = vector.extract_strided_slice %6 {offsets = [8, 0], sizes = [2, 256], strides = [1, 1]} : vector<16x256xf32> to vector<2x256xf32>
    %cst_39 = arith.constant dense<0.000000e+00> : vector<2x256xf32>
    %120 = tpu.matmul %118, %0, %cst_39 {dimension_numbers = #tpu.dot_dimension_numbers<[1], [0], [0], [1], [0, 0, 1, 1], [], []>} : vector<2x64xbf16>, vector<64x256xbf16>, vector<2x256xf32> -> vector<2x256xf32>
    %121 = arith.addf %119, %120 : vector<2x256xf32>
    %122 = arith.negf %121 : vector<2x256xf32>
    %123 = math.exp %122 : vector<2x256xf32>
    %cst_40 = arith.constant 1.000000e+00 : f32
    %124 = vector.broadcast %cst_40 : f32 to vector<2x256xf32>
    %125 = arith.addf %124, %123 : vector<2x256xf32>
    %126 = arith.divf %124, %125 : vector<2x256xf32>
    %127 = vector.extract_strided_slice %126 {offsets = [0, 0], sizes = [2, 64], strides = [1, 1]} : vector<2x256xf32> to vector<2x64xf32>
    %128 = vector.extract_strided_slice %126 {offsets = [0, 64], sizes = [2, 64], strides = [1, 1]} : vector<2x256xf32> to vector<2x64xf32>
    %129 = vector.extract_strided_slice %126 {offsets = [0, 128], sizes = [2, 64], strides = [1, 1]} : vector<2x256xf32> to vector<2x64xf32>
    %cst_41 = arith.constant 2.000000e+00 : f32
    %130 = vector.broadcast %cst_41 : f32 to vector<2x64xf32>
    %131 = arith.mulf %130, %129 : vector<2x64xf32>
    %cst_42 = arith.constant 1.000000e+00 : f32
    %132 = vector.broadcast %cst_42 : f32 to vector<2x64xf32>
    %133 = arith.subf %131, %132 : vector<2x64xf32>
    %134 = vector.extract_strided_slice %126 {offsets = [0, 192], sizes = [2, 64], strides = [1, 1]} : vector<2x256xf32> to vector<2x64xf32>
    %135 = arith.mulf %128, %110 : vector<2x64xf32>
    %136 = arith.mulf %127, %133 : vector<2x64xf32>
    %137 = arith.addf %135, %136 : vector<2x64xf32>
    %138 = math.tanh %137 : vector<2x64xf32>
    %139 = arith.mulf %134, %138 : vector<2x64xf32>
    %140 = arith.truncf %139 : vector<2x64xf32> to vector<2x64xbf16>
    %c4 = arith.constant 4 : index
    %c0_43 = arith.constant 0 : index
    %c0_44 = arith.constant 0 : index
    %141 = vector.load %arg4[%c4, %c0_43, %c0_44] : memref<8x64x32xbf16, #tpu.memory_space<vmem>>, vector<1x64x32xbf16>
    %142 = vector.shape_cast %141 : vector<1x64x32xbf16> to vector<64x32xbf16>
    %cst_45 = arith.constant dense<0.000000e+00> : vector<2x32xf32>
    %143 = tpu.matmul %140, %142, %cst_45 {dimension_numbers = #tpu.dot_dimension_numbers<[1], [0], [0], [1], [0, 0, 1, 1], [], []>} : vector<2x64xbf16>, vector<64x32xbf16>, vector<2x32xf32> -> vector<2x32xf32>
    %144 = arith.addf %117, %143 : vector<2x32xf32>
    %145 = arith.truncf %139 : vector<2x64xf32> to vector<2x64xbf16>
    %146 = vector.extract_strided_slice %6 {offsets = [10, 0], sizes = [2, 256], strides = [1, 1]} : vector<16x256xf32> to vector<2x256xf32>
    %cst_46 = arith.constant dense<0.000000e+00> : vector<2x256xf32>
    %147 = tpu.matmul %145, %0, %cst_46 {dimension_numbers = #tpu.dot_dimension_numbers<[1], [0], [0], [1], [0, 0, 1, 1], [], []>} : vector<2x64xbf16>, vector<64x256xbf16>, vector<2x256xf32> -> vector<2x256xf32>
    %148 = arith.addf %146, %147 : vector<2x256xf32>
    %149 = arith.negf %148 : vector<2x256xf32>
    %150 = math.exp %149 : vector<2x256xf32>
    %cst_47 = arith.constant 1.000000e+00 : f32
    %151 = vector.broadcast %cst_47 : f32 to vector<2x256xf32>
    %152 = arith.addf %151, %150 : vector<2x256xf32>
    %153 = arith.divf %151, %152 : vector<2x256xf32>
    %154 = vector.extract_strided_slice %153 {offsets = [0, 0], sizes = [2, 64], strides = [1, 1]} : vector<2x256xf32> to vector<2x64xf32>
    %155 = vector.extract_strided_slice %153 {offsets = [0, 64], sizes = [2, 64], strides = [1, 1]} : vector<2x256xf32> to vector<2x64xf32>
    %156 = vector.extract_strided_slice %153 {offsets = [0, 128], sizes = [2, 64], strides = [1, 1]} : vector<2x256xf32> to vector<2x64xf32>
    %cst_48 = arith.constant 2.000000e+00 : f32
    %157 = vector.broadcast %cst_48 : f32 to vector<2x64xf32>
    %158 = arith.mulf %157, %156 : vector<2x64xf32>
    %cst_49 = arith.constant 1.000000e+00 : f32
    %159 = vector.broadcast %cst_49 : f32 to vector<2x64xf32>
    %160 = arith.subf %158, %159 : vector<2x64xf32>
    %161 = vector.extract_strided_slice %153 {offsets = [0, 192], sizes = [2, 64], strides = [1, 1]} : vector<2x256xf32> to vector<2x64xf32>
    %162 = arith.mulf %155, %137 : vector<2x64xf32>
    %163 = arith.mulf %154, %160 : vector<2x64xf32>
    %164 = arith.addf %162, %163 : vector<2x64xf32>
    %165 = math.tanh %164 : vector<2x64xf32>
    %166 = arith.mulf %161, %165 : vector<2x64xf32>
    %167 = arith.truncf %166 : vector<2x64xf32> to vector<2x64xbf16>
    %c5 = arith.constant 5 : index
    %c0_50 = arith.constant 0 : index
    %c0_51 = arith.constant 0 : index
    %168 = vector.load %arg4[%c5, %c0_50, %c0_51] : memref<8x64x32xbf16, #tpu.memory_space<vmem>>, vector<1x64x32xbf16>
    %169 = vector.shape_cast %168 : vector<1x64x32xbf16> to vector<64x32xbf16>
    %cst_52 = arith.constant dense<0.000000e+00> : vector<2x32xf32>
    %170 = tpu.matmul %167, %169, %cst_52 {dimension_numbers = #tpu.dot_dimension_numbers<[1], [0], [0], [1], [0, 0, 1, 1], [], []>} : vector<2x64xbf16>, vector<64x32xbf16>, vector<2x32xf32> -> vector<2x32xf32>
    %171 = arith.addf %144, %170 : vector<2x32xf32>
    %172 = arith.truncf %166 : vector<2x64xf32> to vector<2x64xbf16>
    %173 = vector.extract_strided_slice %6 {offsets = [12, 0], sizes = [2, 256], strides = [1, 1]} : vector<16x256xf32> to vector<2x256xf32>
    %cst_53 = arith.constant dense<0.000000e+00> : vector<2x256xf32>
    %174 = tpu.matmul %172, %0, %cst_53 {dimension_numbers = #tpu.dot_dimension_numbers<[1], [0], [0], [1], [0, 0, 1, 1], [], []>} : vector<2x64xbf16>, vector<64x256xbf16>, vector<2x256xf32> -> vector<2x256xf32>
    %175 = arith.addf %173, %174 : vector<2x256xf32>
    %176 = arith.negf %175 : vector<2x256xf32>
    %177 = math.exp %176 : vector<2x256xf32>
    %cst_54 = arith.constant 1.000000e+00 : f32
    %178 = vector.broadcast %cst_54 : f32 to vector<2x256xf32>
    %179 = arith.addf %178, %177 : vector<2x256xf32>
    %180 = arith.divf %178, %179 : vector<2x256xf32>
    %181 = vector.extract_strided_slice %180 {offsets = [0, 0], sizes = [2, 64], strides = [1, 1]} : vector<2x256xf32> to vector<2x64xf32>
    %182 = vector.extract_strided_slice %180 {offsets = [0, 64], sizes = [2, 64], strides = [1, 1]} : vector<2x256xf32> to vector<2x64xf32>
    %183 = vector.extract_strided_slice %180 {offsets = [0, 128], sizes = [2, 64], strides = [1, 1]} : vector<2x256xf32> to vector<2x64xf32>
    %cst_55 = arith.constant 2.000000e+00 : f32
    %184 = vector.broadcast %cst_55 : f32 to vector<2x64xf32>
    %185 = arith.mulf %184, %183 : vector<2x64xf32>
    %cst_56 = arith.constant 1.000000e+00 : f32
    %186 = vector.broadcast %cst_56 : f32 to vector<2x64xf32>
    %187 = arith.subf %185, %186 : vector<2x64xf32>
    %188 = vector.extract_strided_slice %180 {offsets = [0, 192], sizes = [2, 64], strides = [1, 1]} : vector<2x256xf32> to vector<2x64xf32>
    %189 = arith.mulf %182, %164 : vector<2x64xf32>
    %190 = arith.mulf %181, %187 : vector<2x64xf32>
    %191 = arith.addf %189, %190 : vector<2x64xf32>
    %192 = math.tanh %191 : vector<2x64xf32>
    %193 = arith.mulf %188, %192 : vector<2x64xf32>
    %194 = arith.truncf %193 : vector<2x64xf32> to vector<2x64xbf16>
    %c6 = arith.constant 6 : index
    %c0_57 = arith.constant 0 : index
    %c0_58 = arith.constant 0 : index
    %195 = vector.load %arg4[%c6, %c0_57, %c0_58] : memref<8x64x32xbf16, #tpu.memory_space<vmem>>, vector<1x64x32xbf16>
    %196 = vector.shape_cast %195 : vector<1x64x32xbf16> to vector<64x32xbf16>
    %cst_59 = arith.constant dense<0.000000e+00> : vector<2x32xf32>
    %197 = tpu.matmul %194, %196, %cst_59 {dimension_numbers = #tpu.dot_dimension_numbers<[1], [0], [0], [1], [0, 0, 1, 1], [], []>} : vector<2x64xbf16>, vector<64x32xbf16>, vector<2x32xf32> -> vector<2x32xf32>
    %198 = arith.addf %171, %197 : vector<2x32xf32>
    %199 = arith.truncf %193 : vector<2x64xf32> to vector<2x64xbf16>
    %200 = vector.extract_strided_slice %6 {offsets = [14, 0], sizes = [2, 256], strides = [1, 1]} : vector<16x256xf32> to vector<2x256xf32>
    %cst_60 = arith.constant dense<0.000000e+00> : vector<2x256xf32>
    %201 = tpu.matmul %199, %0, %cst_60 {dimension_numbers = #tpu.dot_dimension_numbers<[1], [0], [0], [1], [0, 0, 1, 1], [], []>} : vector<2x64xbf16>, vector<64x256xbf16>, vector<2x256xf32> -> vector<2x256xf32>
    %202 = arith.addf %200, %201 : vector<2x256xf32>
    %203 = arith.negf %202 : vector<2x256xf32>
    %204 = math.exp %203 : vector<2x256xf32>
    %cst_61 = arith.constant 1.000000e+00 : f32
    %205 = vector.broadcast %cst_61 : f32 to vector<2x256xf32>
    %206 = arith.addf %205, %204 : vector<2x256xf32>
    %207 = arith.divf %205, %206 : vector<2x256xf32>
    %208 = vector.extract_strided_slice %207 {offsets = [0, 0], sizes = [2, 64], strides = [1, 1]} : vector<2x256xf32> to vector<2x64xf32>
    %209 = vector.extract_strided_slice %207 {offsets = [0, 64], sizes = [2, 64], strides = [1, 1]} : vector<2x256xf32> to vector<2x64xf32>
    %210 = vector.extract_strided_slice %207 {offsets = [0, 128], sizes = [2, 64], strides = [1, 1]} : vector<2x256xf32> to vector<2x64xf32>
    %cst_62 = arith.constant 2.000000e+00 : f32
    %211 = vector.broadcast %cst_62 : f32 to vector<2x64xf32>
    %212 = arith.mulf %211, %210 : vector<2x64xf32>
    %cst_63 = arith.constant 1.000000e+00 : f32
    %213 = vector.broadcast %cst_63 : f32 to vector<2x64xf32>
    %214 = arith.subf %212, %213 : vector<2x64xf32>
    %215 = vector.extract_strided_slice %207 {offsets = [0, 192], sizes = [2, 64], strides = [1, 1]} : vector<2x256xf32> to vector<2x64xf32>
    %216 = arith.mulf %209, %191 : vector<2x64xf32>
    %217 = arith.mulf %208, %214 : vector<2x64xf32>
    %218 = arith.addf %216, %217 : vector<2x64xf32>
    %219 = math.tanh %218 : vector<2x64xf32>
    %220 = arith.mulf %215, %219 : vector<2x64xf32>
    %221 = arith.truncf %220 : vector<2x64xf32> to vector<2x64xbf16>
    %c7 = arith.constant 7 : index
    %c0_64 = arith.constant 0 : index
    %c0_65 = arith.constant 0 : index
    %222 = vector.load %arg4[%c7, %c0_64, %c0_65] : memref<8x64x32xbf16, #tpu.memory_space<vmem>>, vector<1x64x32xbf16>
    %223 = vector.shape_cast %222 : vector<1x64x32xbf16> to vector<64x32xbf16>
    %cst_66 = arith.constant dense<0.000000e+00> : vector<2x32xf32>
    %224 = tpu.matmul %221, %223, %cst_66 {dimension_numbers = #tpu.dot_dimension_numbers<[1], [0], [0], [1], [0, 0, 1, 1], [], []>} : vector<2x64xbf16>, vector<64x32xbf16>, vector<2x32xf32> -> vector<2x32xf32>
    %225 = arith.addf %198, %224 : vector<2x32xf32>
    %c0_67 = arith.constant 0 : index
    %c0_68 = arith.constant 0 : index
    %226 = vector.load %arg5[%c0_67, %c0_68] : memref<1x32xf32, #tpu.memory_space<vmem>>, vector<1x32xf32>
    %227 = vector.broadcast %226 : vector<1x32xf32> to vector<2x32xf32>
    %228 = arith.addf %225, %227 : vector<2x32xf32>
    %cst_69 = arith.constant 0.000000e+00 : f32
    %229 = vector.broadcast %cst_69 : f32 to vector<2x32xf32>
    %230 = arith.maximumf %228, %229 : vector<2x32xf32>
    %c0_70 = arith.constant 0 : index
    %c0_71 = arith.constant 0 : index
    %231 = vector.load %arg6[%c0_70, %c0_71] : memref<32x2xf32, #tpu.memory_space<vmem>>, vector<32x2xf32>
    %cst_72 = arith.constant dense<0.000000e+00> : vector<2x2xf32>
    %232 = tpu.matmul %230, %231, %cst_72 {dimension_numbers = #tpu.dot_dimension_numbers<[1], [0], [0], [1], [0, 0, 1, 1], [], []>} : vector<2x32xf32>, vector<32x2xf32>, vector<2x2xf32> -> vector<2x2xf32>
    %c0_73 = arith.constant 0 : index
    %c0_74 = arith.constant 0 : index
    %233 = vector.load %arg7[%c0_73, %c0_74] : memref<1x2xf32, #tpu.memory_space<vmem>>, vector<1x2xf32>
    %234 = vector.broadcast %233 : vector<1x2xf32> to vector<2x2xf32>
    %235 = arith.addf %232, %234 : vector<2x2xf32>
    %cst_75 = arith.constant dense<0xFF800000> : vector<2xf32>
    %236 = vector.multi_reduction <maximumf>, %235, %cst_75 [1] : vector<2x2xf32> to vector<2xf32>
    %237 = vector.shape_cast %236 : vector<2xf32> to vector<2x1xf32>
    %238 = vector.broadcast %237 : vector<2x1xf32> to vector<2x2xf32>
    %239 = arith.subf %235, %238 : vector<2x2xf32>
    %240 = math.exp %239 : vector<2x2xf32>
    %cst_76 = arith.constant dense<0.000000e+00> : vector<2xf32>
    %241 = vector.multi_reduction <add>, %240, %cst_76 [1] : vector<2x2xf32> to vector<2xf32>
    %242 = vector.shape_cast %241 : vector<2xf32> to vector<2x1xf32>
    %243 = math.log %242 : vector<2x1xf32>
    %244 = vector.broadcast %243 : vector<2x1xf32> to vector<2x2xf32>
    %245 = arith.subf %239, %244 : vector<2x2xf32>
    %c0_77 = arith.constant 0 : index
    %c0_78 = arith.constant 0 : index
    %246 = vector.load %arg8[%c0_77, %c0_78] : memref<2x2xf32, #tpu.memory_space<vmem>>, vector<2x2xf32>
    tpu.vector_store %arg8[%c0_77, %c0_78], %245 {strides = array<i32>} : memref<2x2xf32, #tpu.memory_space<vmem>>, vector<2x2xf32>,
    return
  }
}

</mosaic_0001>

<bundles_post_ra>
// kernel: lstmfe_forward.1
= control target key start
LH: loop header
LB: loop body
LE: loop exit
PB: predicated region body
PF: predicated region fallthrough
CT: control target
= control target key end

     0   :  { %vm76_vm0 = vcmask 261120   ;;  %s2222_s0 = inlined_call_operand.vmem [shape: bf16[16,32], index: 0, kind: input, shape index: {}]   ;;  %s2223_s1 = inlined_call_operand.vmem [shape: bf16[32,256], index: 1, kind: input, shape index: {}]   ;;  %s2224_s2 = inlined_call_operand.vmem [shape: f32[1,256], index: 2, kind: input, shape index: {}]   ;;  %s2225_s3 = inlined_call_operand.vmem [shape: bf16[64,256], index: 3, kind: input, shape index: {}]   ;;  %s2226_s4 = inlined_call_operand.vmem [shape: bf16[8,64,32], index: 4, kind: input, shape index: {}]   ;;  %s2227_s5 = inlined_call_operand.vmem [shape: f32[1,32], index: 5, kind: input, shape index: {}]   ;;  %s2228_s6 = inlined_call_operand.vmem [shape: f32[32,2], index: 6, kind: input, shape index: {}]   ;;  %s2229_s7 = inlined_call_operand.vmem [shape: f32[1,2], index: 7, kind: input, shape index: {}]   ;;  %s2230_s8 = inlined_call_operand.hbm [shape: f32[2,2], index: 8, kind: output, shape index: {}]  }
   0x1   :  { %v1375_v0 = vld [vmem:[%s2225_s3 + $0x30] sm:$0xf]  ;;  %v1619_v1 = vld [vmem:[%s2225_s3 + $0x34] sm:$0xf0]  ;;  %v1618_v2 = vld [vmem:[%s2225_s3 + $0x34] sm:$0xf] }
   0x2   :  { %v1829_v3 = vor.u32 %v1619_v1, %v1375_v0  ;;  %v1377_v4 = vld [vmem:[%s2225_s3 + $0x38] sm:$0xf0]  ;;  %v1623_v5 = vld [vmem:[%s2223_s1 + $0x14] sm:$0xf]  ;;  %v1367_v9 = vld [vmem:[%s2225_s3 + $0x20] sm:$0xf] }
   0x3   :  { %v1343_v6 = vld [vmem:[%s2223_s1 + $0x18] sm:$0xf0]  ;;  %v1840_v7 = vor.u32 %v1618_v2, %v1377_v4  ;;  %v1617_v10 = vld [vmem:[%s2225_s3 + $0x24] sm:$0xf0]  ;;  %v1616_v11 = vld [vmem:[%s2225_s3 + $0x24] sm:$0xf] }
   0x4   :  { %v1346_v8 = vor.u32 %v1623_v5, %v1343_v6  ;;  %156 = vmatpush.bf16.msra.mxu2 %v1829_v3  ;;  %v1852_v12 = vor.u32 %v1617_v10, %v1367_v9  ;;  %v1369_v13 = vld [vmem:[%s2225_s3 + $0x28] sm:$0xf0]  ;;  %v1341_v14 = vld [vmem:[%s2223_s1 + $0x10] sm:$0xf]  ;;  %v1624_v15 = vld [vmem:[%s2223_s1 + $0x14] sm:$0xf0] }
   0x5   :  { %169 = vmatpush.bf16.msra.mxu3 %v1840_v7  ;;  %v1864_v16 = vor.u32 %v1616_v11, %v1369_v13  ;;  %v1342_v17 = vor.u32 %v1624_v15, %v1341_v14  ;;  %v1621_v18 = vld [vmem:[%s2223_s1 + $0x4] sm:$0xf]  ;;  %v1335_v19 = vld [vmem:[%s2223_s1 + $0x8] sm:$0xf0]  ;;  %v1359_v20 = vld [vmem:[%s2225_s3 + $0x10] sm:$0xf] }
   0x6   :  { %100 = vmatpush.bf16.msra.mxu1 %v1346_v8  ;;  %v1338_v21 = vor.u32 %v1621_v18, %v1335_v19  ;;  %v1615_v22 = vld [vmem:[%s2225_s3 + $0x14] sm:$0xf0]  ;;  %v1614_v23 = vld [vmem:[%s2225_s3 + $0x14] sm:$0xf]  ;;  %v1361_v24 = vld [vmem:[%s2225_s3 + $0x18] sm:$0xf0] }
   0x7   :  { %86 = vmatpush.bf16.msra.mxu0 %v1342_v17  ;;  %v1333_v25 = vld [vmem:[%s2223_s1] sm:$0xf]  ;;  %v1622_v26 = vld [vmem:[%s2223_s1 + $0x4] sm:$0xf0]  ;;  %v1891_v27 = vor.u32 %v1615_v22, %v1359_v20  ;;  %v1897_v30 = vor.u32 %v1614_v23, %v1361_v24  ;;  %v1612_v33 = vld [vmem:[%s2225_s3 + $0x4] sm:$0xf] }
   0x8   :  { %157 = vmatpush.bf16.msra.mxu2 %v1852_v12  ;;  %v1620_v28 = vld [vmem:[%s2222_s0] sm:$0xff]  ;;  %v1334_v29 = vor.u32 %v1622_v26, %v1333_v25  ;;  %v1613_v32 = vld [vmem:[%s2225_s3 + $0x4] sm:$0xf0]  ;;  %v1353_v34 = vld [vmem:[%s2225_s3 + $0x8] sm:$0xf0] }
   0x9   :  { %170 = vmatpush.bf16.msra.mxu3 %v1864_v16  ;;  %v1351_v31 = vld [vmem:[%s2225_s3] sm:$0xf] }
   0xa   :  { %101 = vmatpush.bf16.msra.mxu1 %v1338_v21 }
   0xb   :  { %87 = vmatpush.bf16.msra.mxu0 %v1334_v29 }
   0xe   :  { %261 = vmatpush.bf16.msrb.mxu1 %v1840_v7 }
   0xf   :  { %13 = vsyncpa [#allocation3], 0  ;;  %158 = vmatpush.bf16.msra.mxu2 %v1891_v27  ;;  %1348 = vmatmul.msk.bf16.vlgmr.msra.gmra.mxu1 %vm76_vm0, %v1620_v28  ;;  %v1914_v35 = vor.u32 %v1613_v32, %v1351_v31  ;;  %v1917_v36 = vor.u32 %v1612_v33, %v1353_v34  ;;  %v1772_v37 = vmov 0   ;;  %v1940_v38 = vld [vmem:[%s2224_s2] sm:$0x3]  ;;  %s1773_s2 = smov 64  }
  0x10   :  { %171 = vmatpush.bf16.msra.mxu3 %v1897_v30  ;;  %248 = vmatpush.bf16.msrb.mxu0 %v1829_v3  ;;  %v47_v39 = vperm.slane %v1940_v38, 0  ;;  %v48_v40 = vperm.slane %v1940_v38, 1  ;;  %v1628_v20 = vld [vmem:[%s2226_s4 + $0x18] sm:$0xff]  ;;  %v1627_v21 = vld [vmem:[%s2226_s4 + $0x10] sm:$0xff]  ;;  %v1626_v22 = vld [vmem:[%s2226_s4 + $0x8] sm:$0xff]  ;;  %vm148_vm9 = vcmask 523264  }
  0x11   :  { %1347 = vmatmul.msk.bf16.vlgmr.msra.gmra.mxu0 %vm76_vm0, %v1620_v28  ;;  %v1625_v23 = vld [vmem:[%s2226_s4] sm:$0xff]  ;;  %s1318_s10 = sshll.u32 %s2230_s8, 4  ;;  %s1319_s10 = int_to_ptr.hbm [resolvable:$true] %s1318_s10 }
  0x12   :  { %262 = vmatpush.bf16.msrb.mxu1 %v1864_v16 }
  0x13   :  { %159 = vmatpush.bf16.msra.mxu2 %v1914_v35 }
  0x14   :  { %172 = vmatpush.bf16.msra.mxu3 %v1917_v36  ;;  %249 = vmatpush.bf16.msrb.mxu0 %v1852_v12 }
  0x16   :  { %263 = vmatpush.bf16.msrb.mxu1 %v1897_v30  ;;  %160 = vmatmul.bf16.vlgmr.msra.gmra.mxu2 %v1772_v37 }
  0x17   :  { %173 = vmatmul.bf16.vlgmr.msra.gmra.mxu3 %v1772_v37 }
  0x18   :  { %250 = vmatpush.bf16.msrb.mxu0 %v1891_v27  ;;  %412 = vmatpush.bf16.msrb.mxu3 %v1628_v20 }
  0x1a   :  { %264 = vmatpush.bf16.msrb.mxu1 %v1917_v36 }
  0x1c   :  { %251 = vmatpush.bf16.msrb.mxu0 %v1914_v35  ;;  %413 = vmatpush.bf16.msrb.mxu3 %v1627_v21 }
  0x1e   :  { %438 = vmatpush.bf16.msra.mxu1 %v1840_v7 }
  0x20   :  { %425 = vmatpush.bf16.msra.mxu0 %v1829_v3  ;;  %414 = vmatpush.bf16.msrb.mxu3 %v1626_v22 }
  0x22   :  { %439 = vmatpush.bf16.msra.mxu1 %v1864_v16 }
  0x24   :  { %426 = vmatpush.bf16.msra.mxu0 %v1852_v12  ;;  %415 = vmatpush.bf16.msrb.mxu3 %v1625_v23  ;;  %v1632_v23 = vld [vmem:[%s2226_s4 + $0x38] sm:$0xff] }
  0x25   :  { %375 = vmatpush.bf16.msrb.mxu2 %v1632_v23 }
  0x26   :  { %440 = vmatpush.bf16.msra.mxu1 %v1897_v30 }
  0x28   :  { %427 = vmatpush.bf16.msra.mxu0 %v1891_v27  ;;  %566 = vmatpush.bf16.msra.mxu3 %v1829_v3 }
  0x2a   :  { %441 = vmatpush.bf16.msra.mxu1 %v1917_v36 }
  0x2c   :  { %428 = vmatpush.bf16.msra.mxu0 %v1914_v35  ;;  %567 = vmatpush.bf16.msra.mxu3 %v1852_v12 }
  0x30   :  { %568 = vmatpush.bf16.msra.mxu3 %v1891_v27 }
  0x34   :  { %569 = vmatpush.bf16.msra.mxu3 %v1914_v35 }
  0x8c   :  { %v103_v42 = vpop.f32.mrf.mxu1 }
  0x8d   :  { %v1950_v44 = vadd.f32 %v103_v42, %v48_v40 }
  0x8e   :  { %v89_v41 = vpop.f32.mrf.mxu0 }
  0x8f   :  { %v1946_v43 = vadd.f32 %v89_v41, %v47_v39 }
  0x94   :  { %v1986_v33 = vpop.f32.mrf.mxu1 }
  0x96   :  { %v1988_v34 = vpop.f32.mrf.mxu0 }
  0x99   :  { %v161_v45 = vpop.f32.mrf.mxu2 }
  0x9a   :  { %v178_v46 = vadd.f32 %v161_v45, %v1946_v43  ;;  %v174_v47 = vpop.f32.mrf.mxu3 }
  0x9b   :  { %v179_v48 = vadd.f32 %v174_v47, %v1950_v44 }
  0x9c   :  { %v1381_v49 = vmul.f32 -1.442695, %v178_v46 }
  0x9d   :  { %v1382_v50 = vmul.f32 -1.442695, %v179_v48 }
  0x9e   :  { %1662 = vpow2.f32 %v1381_v49 }
  0x9f   :  { %1664 = vpow2.f32 %v1382_v50 }
  0xa1   :  { %v163_v51 = vpop.f32.mrf.mxu2 }
  0xa2   :  { %v176_v52 = vpop.f32.mrf.mxu3 }
  0xa4   :  { %v1663_v53 = vpop.eup %1662 }
  0xa5   :  { %v1665_v54 = vpop.eup %1664  ;;  %v186_v55 = vadd.f32 1.0, %v1663_v53 }
  0xa6   :  { %v187_v56 = vadd.f32 1.0, %v1665_v54 }
  0xa7   :  { %1666 = vrcp.f32 %v186_v55  ;;  %v199_v6 = vand.u32 2147483648, %v186_v55  ;;  %vm193_vm5 = vweird.f32 %v186_v55  ;;  %v197_v9 = vand.u32 2147483647, %v186_v55 }
  0xa8   :  { %1668 = vrcp.f32 %v187_v56  ;;  %v214_v0 = vand.u32 2147483648, %v187_v56  ;;  %v212_v2 = vand.u32 2147483647, %v187_v56  ;;  %vm208_vm3 = vweird.f32 %v187_v56 }
  0xa9   :  { %v200_v15 = vor.u32 1.1754944e-38, %v199_v6  ;;  %vm198_vm8 = vcmp.eq.f32.partialorder %v197_v9, 8.507059e+37 }
  0xaa   :  { %v215_v8 = vor.u32 1.1754944e-38, %v214_v0  ;;  %vm213_vm6 = vcmp.eq.f32.partialorder %v212_v2, 8.507059e+37 }
  0xad   :  { %v1667_v57 = vpop.eup %1666 }
  0xae   :  { %v1669_v58 = vpop.eup %1668  ;;  %v189_v59 = vmul.f32 %v1667_v57, %v186_v55  ;;  %vm194_vm2 = vweird.f32 %v1667_v57 }
  0xaf   :  { %v204_v60 = vmul.f32 %v1669_v58, %v187_v56  ;;  %vm209_vm1 = vweird.f32 %v1669_v58  ;;  %vm195_vm7 = vmor %vm193_vm5, %vm194_vm2 }
  0xb0   :  { %v190_v61 = vsub.f32 1.0, %v189_v59  ;;  %vm210_vm4 = vmor %vm208_vm3, %vm209_vm1 }
  0xb1   :  { %v205_v62 = vsub.f32 1.0, %v204_v60 }
  0xb2   :  { %v191_v63 = vmul.f32 %v1667_v57, %v190_v61 }
  0xb3   :  { %v206_v1 = vmul.f32 %v1669_v58, %v205_v62 }
  0xb4   :  { %v192_v4 = vadd.f32 %v1667_v57, %v191_v63 }
  0xb5   :  { %v207_v5 = vadd.f32 %v1669_v58, %v206_v1 }
  0xb6   :  { %v196_v13 = vsel %vm195_vm7, %v1667_v57, %v192_v4 }
  0xb7   :  { %v211_v10 = vsel %vm210_vm4, %v1669_v58, %v207_v5  ;;  %v201_v18 = vsel %vm198_vm8, %v200_v15, %v196_v13 }
  0xb8   :  { %v216_v11 = vsel %vm213_vm6, %v215_v8, %v211_v10  ;;  %v220_v24 = vmul.f32 0.0, %v201_v18 }
  0xb9   :  { %v218_v14 = vmul.f32 2.0, %v216_v11 }
  0xbb   :  { %v1383_v17 = vadd.f32 -1.0, %v218_v14 }
  0xbd   :  { %v221_v19 = vmul.f32 %v1383_v17, %v201_v18 }
  0xbf   :  { %223 = vrot.lane.b32.xlu0 %v221_v19, %s1773_s2 }
 0x131   :  { %v224_v25 = vpop.permute.xlu0 %223 }
 0x132   :  { %v1968_v26 = vadd.f32 %v224_v25, %v220_v24  ;;  %v1631_v24 = vld [vmem:[%s2226_s4 + $0x30] sm:$0xff]  ;;  %v1630_v25 = vld [vmem:[%s2226_s4 + $0x28] sm:$0xff] }
 0x133   :  { %376 = vmatpush.bf16.msrb.mxu2 %v1631_v24 }
 0x134   :  { %1670 = vtanh.f32 %v1968_v26 }
 0x137   :  { %377 = vmatpush.bf16.msrb.mxu2 %v1630_v25 }
 0x13a   :  { %v1671_v28 = vpop.eup %1670 }
 0x13b   :  { %v228_v29 = vmul.f32 %v1671_v28, %v216_v11  ;;  %v319_v11 = vrot.slane %v1968_v26, 6  ;;  %v1629_v26 = vld [vmem:[%s2226_s4 + $0x20] sm:$0xff] }
 0x13c   :  { %378 = vmatpush.bf16.msrb.mxu2 %v1629_v26 }
 0x13d   :  { %v229_v31 = vpack.c.bf16 %v228_v29, %v228_v29 }
 0x13f   :  { %239 = vrot.lane.b32.xlu0 %v229_v31, %s1773_s2 }
 0x1b1   :  { %v240_v32 = vpop.permute.xlu0 %239 }
 0x1b2   :  { %1384 = vmatmul.msk.bf16.vlgmr.msrb.gmra.mxu0 %vm148_vm9, %v240_v32  ;;  %1385 = vmatmul.msk.bf16.vlgmr.msrb.gmra.mxu1 %vm148_vm9, %v240_v32 }
 0x1b3   :  { %1430 = vmatmul.msk.bf16.vlgmr.msrb.gmra.mxu3 %vm148_vm9, %v240_v32  ;;  %579 = vmatpush.bf16.msrb.mxu0 %v1840_v7 }
 0x1b4   :  { %720 = vmatpush.bf16.msrb.mxu3 %v1840_v7 }
 0x1b7   :  { %580 = vmatpush.bf16.msrb.mxu0 %v1864_v16 }
 0x1b8   :  { %721 = vmatpush.bf16.msrb.mxu3 %v1864_v16 }
 0x1bb   :  { %581 = vmatpush.bf16.msrb.mxu0 %v1897_v30 }
 0x1bc   :  { %722 = vmatpush.bf16.msrb.mxu3 %v1897_v30 }
 0x1bf   :  { %582 = vmatpush.bf16.msrb.mxu0 %v1917_v36 }
 0x1c0   :  { %723 = vmatpush.bf16.msrb.mxu3 %v1917_v36 }
 0x22f   :  { %v253_v37 = vpop.f32.mrf.mxu0  ;;  %v266_v41 = vpop.f32.mrf.mxu1 }
 0x230   :  { %v272_v42 = vrot.slane %v253_v37, 6  ;;  %v273_v45 = vrot.slane %v266_v41, 6 }
 0x232   :  { %v276_v46 = vadd.f32 %v272_v42, %v1946_v43  ;;  %v277_v47 = vadd.f32 %v273_v45, %v1950_v44 }
 0x234   :  { %v1386_v48 = vmul.f32 -1.442695, %v276_v46  ;;  %v1387_v49 = vmul.f32 -1.442695, %v277_v47 }
 0x236   :  { %1672 = vpow2.f32 %v1386_v48  ;;  %v1992_v50 = vpop.f32.mrf.mxu3 }
 0x237   :  { %1674 = vpow2.f32 %v1387_v49  ;;  %v255_v51 = vpop.f32.mrf.mxu0  ;;  %v268_v52 = vpop.f32.mrf.mxu1 }
 0x23c   :  { %v1673_v53 = vpop.eup %1672 }
 0x23d   :  { %v1675_v54 = vpop.eup %1674  ;;  %v284_v55 = vadd.f32 1.0, %v1673_v53 }
 0x23e   :  { %v285_v56 = vadd.f32 1.0, %v1675_v54  ;;  %v419_v57 = vpop.f32.mrf.mxu3 }
 0x23f   :  { %1676 = vrcp.f32 %v284_v55  ;;  %v297_v63 = vand.u32 2147483648, %v284_v55  ;;  %v295_v2 = vand.u32 2147483647, %v284_v55  ;;  %vm291_vm12 = vweird.f32 %v284_v55 }
 0x240   :  { %1678 = vrcp.f32 %v285_v56  ;;  %v312_v4 = vand.u32 2147483648, %v285_v56  ;;  %v310_v6 = vand.u32 2147483647, %v285_v56  ;;  %vm306_vm14 = vweird.f32 %v285_v56 }
 0x241   :  { %v298_v9 = vor.u32 1.1754944e-38, %v297_v63  ;;  %vm296_vm15 = vcmp.eq.f32.partialorder %v295_v2, 8.507059e+37 }
 0x242   :  { %v313_v14 = vor.u32 1.1754944e-38, %v312_v4  ;;  %vm311_vm2 = vcmp.eq.f32.partialorder %v310_v6, 8.507059e+37 }
 0x245   :  { %v1677_v58 = vpop.eup %1676 }
 0x246   :  { %v1679_v59 = vpop.eup %1678  ;;  %v287_v60 = vmul.f32 %v1677_v58, %v284_v55  ;;  %vm292_vm10 = vweird.f32 %v1677_v58 }
 0x247   :  { %v302_v61 = vmul.f32 %v1679_v59, %v285_v56  ;;  %vm307_vm11 = vweird.f32 %v1679_v59  ;;  %vm293_vm13 = vmor %vm291_vm12, %vm292_vm10 }
 0x248   :  { %v288_v62 = vsub.f32 1.0, %v287_v60  ;;  %vm308_vm1 = vmor %vm306_vm14, %vm307_vm11 }
 0x249   :  { %v303_v0 = vsub.f32 1.0, %v302_v61 }
 0x24a   :  { %v289_v1 = vmul.f32 %v1677_v58, %v288_v62 }
 0x24b   :  { %v304_v5 = vmul.f32 %v1679_v59, %v303_v0 }
 0x24c   :  { %v290_v8 = vadd.f32 %v1677_v58, %v289_v1 }
 0x24d   :  { %v305_v10 = vadd.f32 %v1679_v59, %v304_v5 }
 0x24e   :  { %v294_v13 = vsel %vm293_vm13, %v1677_v58, %v290_v8 }
 0x24f   :  { %v299_v15 = vsel %vm296_vm15, %v298_v9, %v294_v13  ;;  %v309_v17 = vsel %vm308_vm1, %v1679_v59, %v305_v10 }
 0x250   :  { %v314_v18 = vsel %vm311_vm2, %v313_v14, %v309_v17  ;;  %v321_v19 = vmul.f32 %v319_v11, %v299_v15 }
 0x251   :  { %v316_v20 = vmul.f32 2.0, %v314_v18 }
 0x253   :  { %v1388_v21 = vadd.f32 -1.0, %v316_v20 }
 0x255   :  { %v322_v22 = vmul.f32 %v1388_v21, %v299_v15 }
 0x257   :  { %324 = vrot.lane.b32.xlu1 %v322_v22, %s1773_s2 }
 0x2c9   :  { %v325_v28 = vpop.permute.xlu1 %324 }
 0x2ca   :  { %v327_v29 = vadd.f32 %v325_v28, %v321_v19  ;;  %v1636_v28 = vld [vmem:[%s2226_s4 + $0x58] sm:$0xff] }
 0x2cb   :  { %552 = vmatpush.bf16.msra.mxu2 %v1636_v28 }
 0x2cc   :  { %1680 = vtanh.f32 %v327_v29  ;;  %v496_v17 = vrot.slane %v327_v29, 6  ;;  %v1635_v29 = vld [vmem:[%s2226_s4 + $0x50] sm:$0xff] }
 0x2cf   :  { %553 = vmatpush.bf16.msra.mxu2 %v1635_v29 }
 0x2d2   :  { %v1681_v31 = vpop.eup %1680 }
 0x2d3   :  { %v329_v32 = vmul.f32 %v1681_v31, %v314_v18  ;;  %v1634_v31 = vld [vmem:[%s2226_s4 + $0x48] sm:$0xff] }
 0x2d4   :  { %554 = vmatpush.bf16.msra.mxu2 %v1634_v31 }
 0x2d5   :  { %v330_v37 = vpack.c.bf16 %v329_v32, %v329_v32  ;;  %v1633_v32 = vld [vmem:[%s2226_s4 + $0x40] sm:$0xff] }
 0x2d7   :  { %v341_v41 = vrot.slane %v330_v37, 1 }
 0x2d8   :  { %555 = vmatpush.bf16.msra.mxu2 %v1633_v32  ;;  %v1640_v32 = vld [vmem:[%s2226_s4 + $0x78] sm:$0xff] }
 0x2d9   :  { %342 = vrot.lane.b32.xlu1 %v341_v41, %s1773_s2  ;;  %693 = vmatpush.bf16.msrb.mxu1 %v1640_v32  ;;  %v1641_v32 = vld [vmem:[%s2226_s4 + $0x80] sm:$0xff] }
 0x34b   :  { %v343_v42 = vpop.permute.xlu1 %342 }
 0x34c   :  { %1413 = vmatmul.msk.bf16.vlgmr.msrb.gmra.mxu2 %vm148_vm9, %v343_v42  ;;  %1431 = vmatmul.msk.bf16.vlgmr.msra.gmra.mxu0 %vm148_vm9, %v343_v42 }
 0x34d   :  { %1432 = vmatmul.msk.bf16.vlgmr.msra.gmra.mxu1 %vm148_vm9, %v343_v42  ;;  %707 = vmatpush.bf16.msrb.mxu2 %v1829_v3 }
 0x351   :  { %708 = vmatpush.bf16.msrb.mxu2 %v1852_v12 }
 0x355   :  { %709 = vmatpush.bf16.msrb.mxu2 %v1891_v27 }
 0x359   :  { %710 = vmatpush.bf16.msrb.mxu2 %v1914_v35 }
 0x3c9   :  { %v430_v45 = vpop.f32.mrf.mxu0 }
 0x3ca   :  { %v449_v46 = vrot.slane %v430_v45, 4  ;;  %v443_v47 = vpop.f32.mrf.mxu1 }
 0x3cb   :  { %v450_v48 = vrot.slane %v443_v47, 4 }
 0x3cc   :  { %v453_v49 = vadd.f32 %v449_v46, %v1946_v43 }
 0x3cd   :  { %v454_v51 = vadd.f32 %v450_v48, %v1950_v44 }
 0x3ce   :  { %v1433_v52 = vmul.f32 -1.442695, %v453_v49 }
 0x3cf   :  { %v1434_v53 = vmul.f32 -1.442695, %v454_v51  ;;  %v2014_v54 = vpop.f32.mrf.mxu2 }
 0x3d0   :  { %1682 = vpow2.f32 %v1433_v52 }
 0x3d1   :  { %1684 = vpow2.f32 %v1434_v53  ;;  %v432_v55 = vpop.f32.mrf.mxu0  ;;  %v418_v53 = vadd.f32 %v1992_v50, %v2014_v54 }
 0x3d2   :  { %v445_v56 = vpop.f32.mrf.mxu1 }
 0x3d6   :  { %v1683_v57 = vpop.eup %1682 }
 0x3d7   :  { %v1685_v58 = vpop.eup %1684  ;;  %v461_v59 = vadd.f32 1.0, %v1683_v57  ;;  %v382_v60 = vpop.f32.mrf.mxu2 }
 0x3d8   :  { %v462_v61 = vadd.f32 1.0, %v1685_v58 }
 0x3d9   :  { %1686 = vrcp.f32 %v461_v59  ;;  %v474_v4 = vand.u32 2147483648, %v461_v59  ;;  %v472_v8 = vand.u32 2147483647, %v461_v59  ;;  %vm468_vm5 = vweird.f32 %v461_v59 }
 0x3da   :  { %1688 = vrcp.f32 %v462_v61  ;;  %v489_v9 = vand.u32 2147483648, %v462_v61  ;;  %v487_v11 = vand.u32 2147483647, %v462_v61  ;;  %vm483_vm7 = vweird.f32 %v462_v61 }
 0x3db   :  { %v475_v14 = vor.u32 1.1754944e-38, %v474_v4  ;;  %vm473_vm8 = vcmp.eq.f32.partialorder %v472_v8, 8.507059e+37 }
 0x3dc   :  { %v490_v19 = vor.u32 1.1754944e-38, %v489_v9  ;;  %vm488_vm11 = vcmp.eq.f32.partialorder %v487_v11, 8.507059e+37 }
 0x3df   :  { %v1687_v62 = vpop.eup %1686 }
 0x3e0   :  { %v1689_v63 = vpop.eup %1688  ;;  %v464_v0 = vmul.f32 %v1687_v62, %v461_v59  ;;  %vm469_vm3 = vweird.f32 %v1687_v62 }
 0x3e1   :  { %v479_v1 = vmul.f32 %v1689_v63, %v462_v61  ;;  %vm484_vm4 = vweird.f32 %v1689_v63  ;;  %vm470_vm6 = vmor %vm468_vm5, %vm469_vm3 }
 0x3e2   :  { %v465_v2 = vsub.f32 1.0, %v464_v0  ;;  %vm485_vm10 = vmor %vm483_vm7, %vm484_vm4 }
 0x3e3   :  { %v480_v5 = vsub.f32 1.0, %v479_v1 }
 0x3e4   :  { %v466_v6 = vmul.f32 %v1687_v62, %v465_v2 }
 0x3e5   :  { %v481_v10 = vmul.f32 %v1689_v63, %v480_v5 }
 0x3e6   :  { %v467_v13 = vadd.f32 %v1687_v62, %v466_v6 }
 0x3e7   :  { %v482_v15 = vadd.f32 %v1689_v63, %v481_v10 }
 0x3e8   :  { %v471_v18 = vsel %vm470_vm6, %v1687_v62, %v467_v13 }
 0x3e9   :  { %v476_v20 = vsel %vm473_vm8, %v475_v14, %v471_v18  ;;  %v486_v21 = vsel %vm485_vm10, %v1689_v63, %v482_v15 }
 0x3ea   :  { %v491_v22 = vsel %vm488_vm11, %v490_v19, %v486_v21  ;;  %v498_v23 = vmul.f32 %v496_v17, %v476_v20 }
 0x3eb   :  { %v493_v24 = vmul.f32 2.0, %v491_v22 }
 0x3ed   :  { %v1435_v25 = vadd.f32 -1.0, %v493_v24 }
 0x3ef   :  { %v499_v26 = vmul.f32 %v1435_v25, %v476_v20 }
 0x3f1   :  { %501 = vrot.lane.b32.xlu2 %v499_v26, %s1773_s2 }
 0x44b   :  { %v502_v37 = vpop.permute.xlu2 %501 }
 0x44c   :  { %v2030_v41 = vadd.f32 %v502_v37, %v498_v23  ;;  %v1639_v37 = vld [vmem:[%s2226_s4 + $0x70] sm:$0xff] }
 0x44d   :  { %694 = vmatpush.bf16.msrb.mxu1 %v1639_v37 }
 0x44e   :  { %1690 = vtanh.f32 %v2030_v41  ;;  %v637_v24 = vrot.slane %v2030_v41, 6  ;;  %v1638_v41 = vld [vmem:[%s2226_s4 + $0x68] sm:$0xff] }
 0x451   :  { %695 = vmatpush.bf16.msrb.mxu1 %v1638_v41 }
 0x454   :  { %v1691_v42 = vpop.eup %1690 }
 0x455   :  { %v506_v45 = vmul.f32 %v1691_v42, %v491_v22  ;;  %v1637_v42 = vld [vmem:[%s2226_s4 + $0x60] sm:$0xff] }
 0x456   :  { %696 = vmatpush.bf16.msrb.mxu1 %v1637_v42 }
 0x457   :  { %v507_v46 = vpack.c.bf16 %v506_v45, %v506_v45 }
 0x459   :  { %v518_v47 = vrot.slane %v507_v46, 2 }
 0x45a   :  { %841 = vmatpush.bf16.msra.mxu1 %v1829_v3 }
 0x45b   :  { %519 = vrot.lane.b32.xlu2 %v518_v47, %s1773_s2 }
 0x45e   :  { %842 = vmatpush.bf16.msra.mxu1 %v1852_v12 }
 0x462   :  { %843 = vmatpush.bf16.msra.mxu1 %v1891_v27 }
 0x466   :  { %844 = vmatpush.bf16.msra.mxu1 %v1914_v35 }
 0x4b5   :  { %v520_v48 = vpop.permute.xlu2 %519 }
 0x4b6   :  { %1460 = vmatmul.msk.bf16.vlgmr.msra.gmra.mxu2 %vm148_vm9, %v520_v48  ;;  %1461 = vmatmul.msk.bf16.vlgmr.msra.gmra.mxu3 %vm148_vm9, %v520_v48 }
 0x4b7   :  { %1462 = vmatmul.msk.bf16.vlgmr.msrb.gmra.mxu0 %vm148_vm9, %v520_v48  ;;  %854 = vmatpush.bf16.msra.mxu2 %v1840_v7 }
 0x4bb   :  { %855 = vmatpush.bf16.msra.mxu2 %v1864_v16 }
 0x4bf   :  { %856 = vmatpush.bf16.msra.mxu2 %v1897_v30 }
 0x4c3   :  { %857 = vmatpush.bf16.msra.mxu2 %v1917_v36 }
 0x534   :  { %v584_v49 = vpop.f32.mrf.mxu0 }
 0x535   :  { %v591_v51 = vrot.slane %v584_v49, 2 }
 0x537   :  { %v595_v52 = vadd.f32 %v591_v51, %v1950_v44 }
 0x539   :  { %v1464_v55 = vmul.f32 -1.442695, %v595_v52  ;;  %v557_v56 = vpop.f32.mrf.mxu2  ;;  %v571_v57 = vpop.f32.mrf.mxu3 }
 0x53a   :  { %v2047_v58 = vadd.f32 %v557_v56, %v418_v53  ;;  %v590_v59 = vrot.slane %v571_v57, 2  ;;  %v2085_v56 = vadd.f32 %v1988_v34, %v47_v39  ;;  %v2090_v57 = vadd.f32 %v1986_v33, %v48_v40 }
 0x53b   :  { %1692 = vpow2.f32 %v1464_v55 }
 0x53c   :  { %v594_v60 = vadd.f32 %v590_v59, %v1946_v43  ;;  %v586_v61 = vpop.f32.mrf.mxu0 }
 0x53e   :  { %v1463_v62 = vmul.f32 -1.442695, %v594_v60 }
 0x540   :  { %1694 = vpow2.f32 %v1463_v62 }
 0x541   :  { %v1693_v63 = vpop.eup %1692  ;;  %v559_v0 = vpop.f32.mrf.mxu2 }
 0x542   :  { %v573_v1 = vpop.f32.mrf.mxu3  ;;  %v603_v2 = vadd.f32 1.0, %v1693_v63 }
 0x544   :  { %1696 = vrcp.f32 %v603_v2  ;;  %v630_v6 = vand.u32 2147483648, %v603_v2  ;;  %v628_v10 = vand.u32 2147483647, %v603_v2  ;;  %vm624_vm13 = vweird.f32 %v603_v2 }
 0x546   :  { %v1695_v44 = vpop.eup %1694  ;;  %v631_v14 = vor.u32 1.1754944e-38, %v630_v6  ;;  %vm629_vm15 = vcmp.eq.f32.partialorder %v628_v10, 8.507059e+37 }
 0x547   :  { %v602_v4 = vadd.f32 1.0, %v1695_v44 }
 0x549   :  { %1698 = vrcp.f32 %v602_v4  ;;  %v615_v15 = vand.u32 2147483648, %v602_v4  ;;  %v613_v19 = vand.u32 2147483647, %v602_v4  ;;  %vm609_vm2 = vweird.f32 %v602_v4 }
 0x54a   :  { %v1697_v50 = vpop.eup %1696 }
 0x54b   :  { %v620_v54 = vmul.f32 %v1697_v50, %v603_v2  ;;  %vm625_vm12 = vweird.f32 %v1697_v50  ;;  %v616_v23 = vor.u32 1.1754944e-38, %v615_v15  ;;  %vm614_vm4 = vcmp.eq.f32.partialorder %v613_v19, 8.507059e+37 }
 0x54c   :  { %vm626_vm14 = vmor %vm624_vm13, %vm625_vm12 }
 0x54d   :  { %v621_v5 = vsub.f32 1.0, %v620_v54 }
 0x54f   :  { %v1699_v8 = vpop.eup %1698  ;;  %v622_v9 = vmul.f32 %v1697_v50, %v621_v5 }
 0x550   :  { %v605_v43 = vmul.f32 %v1699_v8, %v602_v4  ;;  %vm610_vm1 = vweird.f32 %v1699_v8 }
 0x551   :  { %v623_v11 = vadd.f32 %v1697_v50, %v622_v9  ;;  %vm611_vm3 = vmor %vm609_vm2, %vm610_vm1 }
 0x552   :  { %v606_v13 = vsub.f32 1.0, %v605_v43 }
 0x553   :  { %v627_v17 = vsel %vm626_vm14, %v1697_v50, %v623_v11 }
 0x554   :  { %v607_v18 = vmul.f32 %v1699_v8, %v606_v13  ;;  %v632_v20 = vsel %vm629_vm15, %v631_v14, %v627_v17 }
 0x555   :  { %v634_v21 = vmul.f32 2.0, %v632_v20 }
 0x556   :  { %v608_v22 = vadd.f32 %v1699_v8, %v607_v18 }
 0x557   :  { %v1465_v26 = vadd.f32 -1.0, %v634_v21 }
 0x558   :  { %v612_v25 = vsel %vm611_vm3, %v1699_v8, %v608_v22 }
 0x559   :  { %v617_v28 = vsel %vm614_vm4, %v616_v23, %v612_v25 }
 0x55a   :  { %v640_v29 = vmul.f32 %v1465_v26, %v617_v28  ;;  %v639_v31 = vmul.f32 %v637_v24, %v617_v28  ;;  %v1644_v28 = vld [vmem:[%s2226_s4 + $0x98] sm:$0xff] }
 0x55b   :  { %827 = vmatpush.bf16.msra.mxu0 %v1644_v28 }
 0x55c   :  { %642 = vrot.lane.b32.xlu0 %v640_v29, %s1773_s2  ;;  %v1643_v29 = vld [vmem:[%s2226_s4 + $0x90] sm:$0xff] }
 0x55f   :  { %828 = vmatpush.bf16.msra.mxu0 %v1643_v29 }
 0x5ce   :  { %v643_v45 = vpop.permute.xlu0 %642 }
 0x5cf   :  { %v2065_v46 = vadd.f32 %v643_v45, %v639_v31  ;;  %v1642_v31 = vld [vmem:[%s2226_s4 + $0x88] sm:$0xff] }
 0x5d0   :  { %829 = vmatpush.bf16.msra.mxu0 %v1642_v31 }
 0x5d1   :  { %1700 = vtanh.f32 %v2065_v46  ;;  %v772_v17 = vrot.slane %v2065_v46, 6 }
 0x5d4   :  { %830 = vmatpush.bf16.msra.mxu0 %v1641_v32 }
 0x5d7   :  { %v1701_v47 = vpop.eup %1700 }
 0x5d8   :  { %v647_v48 = vmul.f32 %v1701_v47, %v632_v20  ;;  %982 = vmatpush.bf16.msrb.mxu0 %v1829_v3 }
 0x5da   :  { %v648_v49 = vpack.c.bf16 %v647_v48, %v647_v48 }
 0x5dc   :  { %v659_v51 = vrot.slane %v648_v49, 3  ;;  %983 = vmatpush.bf16.msrb.mxu0 %v1852_v12 }
 0x5de   :  { %660 = vrot.lane.b32.xlu1 %v659_v51, %s1773_s2 }
 0x5e0   :  { %984 = vmatpush.bf16.msrb.mxu0 %v1891_v27 }
 0x5e4   :  { %985 = vmatpush.bf16.msrb.mxu0 %v1914_v35 }
 0x650   :  { %v661_v52 = vpop.permute.xlu1 %660 }
 0x651   :  { %1490 = vmatmul.msk.bf16.vlgmr.msrb.gmra.mxu1 %vm148_vm9, %v661_v52  ;;  %1491 = vmatmul.msk.bf16.vlgmr.msrb.gmra.mxu2 %vm148_vm9, %v661_v52 }
 0x652   :  { %1492 = vmatmul.msk.bf16.vlgmr.msrb.gmra.mxu3 %vm148_vm9, %v661_v52  ;;  %995 = vmatpush.bf16.msrb.mxu1 %v1840_v7 }
 0x656   :  { %996 = vmatpush.bf16.msrb.mxu1 %v1864_v16 }
 0x65a   :  { %997 = vmatpush.bf16.msrb.mxu1 %v1897_v30 }
 0x65e   :  { %998 = vmatpush.bf16.msrb.mxu1 %v1917_v36 }
 0x6ce   :  { %v698_v53 = vpop.f32.mrf.mxu1 }
 0x6cf   :  { %v2080_v55 = vadd.f32 %v698_v53, %v2047_v58 }
 0x6d4   :  { %v712_v59 = vpop.f32.mrf.mxu2 }
 0x6d5   :  { %v729_v60 = vadd.f32 %v712_v59, %v2085_v56  ;;  %v725_v61 = vpop.f32.mrf.mxu3 }
 0x6d6   :  { %v730_v62 = vadd.f32 %v725_v61, %v2090_v57  ;;  %v700_v63 = vpop.f32.mrf.mxu1 }
 0x6d7   :  { %v1493_v0 = vmul.f32 -1.442695, %v729_v60 }
 0x6d8   :  { %v1494_v58 = vmul.f32 -1.442695, %v730_v62 }
 0x6d9   :  { %1702 = vpow2.f32 %v1493_v0 }
 0x6da   :  { %1704 = vpow2.f32 %v1494_v58 }
 0x6dc   :  { %v714_v1 = vpop.f32.mrf.mxu2 }
 0x6dd   :  { %v727_v2 = vpop.f32.mrf.mxu3 }
 0x6df   :  { %v1703_v39 = vpop.eup %1702 }
 0x6e0   :  { %v1705_v34 = vpop.eup %1704  ;;  %v737_v44 = vadd.f32 1.0, %v1703_v39 }
 0x6e1   :  { %v738_v38 = vadd.f32 1.0, %v1705_v34 }
 0x6e2   :  { %1706 = vrcp.f32 %v737_v44  ;;  %v750_v6 = vand.u32 2147483648, %v737_v44  ;;  %v748_v9 = vand.u32 2147483647, %v737_v44  ;;  %vm744_vm7 = vweird.f32 %v737_v44 }
 0x6e3   :  { %1708 = vrcp.f32 %v738_v38  ;;  %v765_v10 = vand.u32 2147483648, %v738_v38  ;;  %v763_v11 = vand.u32 2147483647, %v738_v38  ;;  %vm759_vm10 = vweird.f32 %v738_v38 }
 0x6e4   :  { %v751_v14 = vor.u32 1.1754944e-38, %v750_v6  ;;  %vm749_vm11 = vcmp.eq.f32.partialorder %v748_v9, 8.507059e+37 }
 0x6e5   :  { %v766_v19 = vor.u32 1.1754944e-38, %v765_v10  ;;  %vm764_vm13 = vcmp.eq.f32.partialorder %v763_v11, 8.507059e+37 }
 0x6e8   :  { %v1707_v40 = vpop.eup %1706 }
 0x6e9   :  { %v1709_v33 = vpop.eup %1708  ;;  %v740_v4 = vmul.f32 %v1707_v40, %v737_v44  ;;  %vm745_vm5 = vweird.f32 %v1707_v40 }
 0x6ea   :  { %v755_v50 = vmul.f32 %v1709_v33, %v738_v38  ;;  %vm760_vm6 = vweird.f32 %v1709_v33  ;;  %vm746_vm8 = vmor %vm744_vm7, %vm745_vm5 }
 0x6eb   :  { %v741_v54 = vsub.f32 1.0, %v740_v4  ;;  %vm761_vm12 = vmor %vm759_vm10, %vm760_vm6 }
 0x6ec   :  { %v756_v5 = vsub.f32 1.0, %v755_v50 }
 0x6ed   :  { %v742_v8 = vmul.f32 %v1707_v40, %v741_v54 }
 0x6ee   :  { %v757_v43 = vmul.f32 %v1709_v33, %v756_v5 }
 0x6ef   :  { %v743_v13 = vadd.f32 %v1707_v40, %v742_v8 }
 0x6f0   :  { %v758_v15 = vadd.f32 %v1709_v33, %v757_v43 }
 0x6f1   :  { %v747_v18 = vsel %vm746_vm8, %v1707_v40, %v743_v13 }
 0x6f2   :  { %v752_v20 = vsel %vm749_vm11, %v751_v14, %v747_v18  ;;  %v762_v21 = vsel %vm761_vm12, %v1709_v33, %v758_v15 }
 0x6f3   :  { %v767_v22 = vsel %vm764_vm13, %v766_v19, %v762_v21  ;;  %v774_v23 = vmul.f32 %v772_v17, %v752_v20  ;;  %v1648_v21 = vld [vmem:[%s2226_s4 + $0xb8] sm:$0xff] }
 0x6f4   :  { %v769_v24 = vmul.f32 2.0, %v767_v22  ;;  %968 = vmatpush.bf16.msra.mxu3 %v1648_v21 }
 0x6f6   :  { %v1495_v25 = vadd.f32 -1.0, %v769_v24  ;;  %v1645_v24 = vld [vmem:[%s2226_s4 + $0xa0] sm:$0xff] }
 0x6f8   :  { %v775_v26 = vmul.f32 %v1495_v25, %v752_v20 }
 0x6fa   :  { %777 = vrot.lane.b32.xlu2 %v775_v26, %s1773_s2 }
 0x754   :  { %v778_v37 = vpop.permute.xlu2 %777 }
 0x755   :  { %v780_v41 = vadd.f32 %v778_v37, %v774_v23  ;;  %v1646_v23 = vld [vmem:[%s2226_s4 + $0xa8] sm:$0xff] }
 0x757   :  { %1710 = vtanh.f32 %v780_v41  ;;  %v912_v54 = vrot.slane %v780_v41, 6 }
 0x75d   :  { %v1711_v42 = vpop.eup %1710 }
 0x75e   :  { %v782_v45 = vmul.f32 %v1711_v42, %v767_v22  ;;  %v1647_v22 = vld [vmem:[%s2226_s4 + $0xb0] sm:$0xff] }
 0x75f   :  { %969 = vmatpush.bf16.msra.mxu3 %v1647_v22 }
 0x760   :  { %v783_v46 = vpack.c.bf16 %v782_v45, %v782_v45 }
 0x762   :  { %794 = vrot.lane.b32.xlu0 %v783_v46, %s1773_s2 }
 0x763   :  { %970 = vmatpush.bf16.msra.mxu3 %v1646_v23 }
 0x767   :  { %971 = vmatpush.bf16.msra.mxu3 %v1645_v24 }
 0x76b   :  { %1123 = vmatpush.bf16.msrb.mxu3 %v1829_v3 }
 0x76f   :  { %1124 = vmatpush.bf16.msrb.mxu3 %v1852_v12 }
 0x773   :  { %1125 = vmatpush.bf16.msrb.mxu3 %v1891_v27 }
 0x777   :  { %1126 = vmatpush.bf16.msrb.mxu3 %v1914_v35 }
 0x7d4   :  { %v795_v47 = vpop.permute.xlu0 %794 }
 0x7d5   :  { %1520 = vmatmul.msk.bf16.vlgmr.msra.gmra.mxu0 %vm148_vm9, %v795_v47  ;;  %1521 = vmatmul.msk.bf16.vlgmr.msra.gmra.mxu1 %vm148_vm9, %v795_v47 }
 0x7d6   :  { %1522 = vmatmul.msk.bf16.vlgmr.msra.gmra.mxu2 %vm148_vm9, %v795_v47  ;;  %1136 = vmatpush.bf16.msra.mxu0 %v1840_v7 }
 0x7da   :  { %1137 = vmatpush.bf16.msra.mxu0 %v1864_v16 }
 0x7de   :  { %1138 = vmatpush.bf16.msra.mxu0 %v1897_v30 }
 0x7e2   :  { %1139 = vmatpush.bf16.msra.mxu0 %v1917_v36 }
 0x852   :  { %v832_v48 = vpop.f32.mrf.mxu0  ;;  %v846_v49 = vpop.f32.mrf.mxu1 }
 0x853   :  { %v2121_v51 = vadd.f32 %v832_v48, %v2080_v55  ;;  %v865_v52 = vrot.slane %v846_v49, 6 }
 0x855   :  { %v869_v53 = vadd.f32 %v865_v52, %v2085_v56 }
 0x857   :  { %v1523_v59 = vmul.f32 -1.442695, %v869_v53 }
 0x859   :  { %1712 = vpow2.f32 %v1523_v59  ;;  %v859_v60 = vpop.f32.mrf.mxu2 }
 0x85a   :  { %v866_v61 = vrot.slane %v859_v60, 6  ;;  %v834_v62 = vpop.f32.mrf.mxu0  ;;  %v848_v7 = vpop.f32.mrf.mxu1 }
 0x85c   :  { %v870_v16 = vadd.f32 %v866_v61, %v2090_v57 }
 0x85e   :  { %v1524_v63 = vmul.f32 -1.442695, %v870_v16 }
 0x85f   :  { %v1713_v30 = vpop.eup %1712 }
 0x860   :  { %v877_v0 = vadd.f32 1.0, %v1713_v30  ;;  %1714 = vpow2.f32 %v1524_v63 }
 0x861   :  { %v861_v36 = vpop.f32.mrf.mxu2 }
 0x862   :  { %1716 = vrcp.f32 %v877_v0  ;;  %v890_v34 = vand.u32 2147483648, %v877_v0  ;;  %v888_v38 = vand.u32 2147483647, %v877_v0  ;;  %vm884_vm15 = vweird.f32 %v877_v0 }
 0x864   :  { %v891_v50 = vor.u32 1.1754944e-38, %v890_v34  ;;  %vm889_vm2 = vcmp.eq.f32.partialorder %v888_v38, 8.507059e+37 }
 0x866   :  { %v1715_v58 = vpop.eup %1714 }
 0x867   :  { %v878_v55 = vadd.f32 1.0, %v1715_v58 }
 0x868   :  { %v1717_v1 = vpop.eup %1716 }
 0x869   :  { %1718 = vrcp.f32 %v878_v55  ;;  %v880_v2 = vmul.f32 %v1717_v1, %v877_v0  ;;  %vm885_vm14 = vweird.f32 %v1717_v1  ;;  %v905_v9 = vand.u32 2147483648, %v878_v55 }
 0x86a   :  { %vm886_vm1 = vmor %vm884_vm15, %vm885_vm14  ;;  %v903_v11 = vand.u32 2147483647, %v878_v55  ;;  %vm899_vm4 = vweird.f32 %v878_v55 }
 0x86b   :  { %v881_v39 = vsub.f32 1.0, %v880_v2  ;;  %v906_v14 = vor.u32 1.1754944e-38, %v905_v9 }
 0x86c   :  { %vm904_vm6 = vcmp.eq.f32.partialorder %v903_v11, 8.507059e+37  ;;  %v1651_v11 = vld [vmem:[%s2226_s4 + $0xd0] sm:$0xff] }
 0x86d   :  { %v882_v44 = vmul.f32 %v1717_v1, %v881_v39 }
 0x86f   :  { %v1719_v40 = vpop.eup %1718  ;;  %v883_v33 = vadd.f32 %v1717_v1, %v882_v44 }
 0x870   :  { %v895_v4 = vmul.f32 %v1719_v40, %v878_v55  ;;  %vm900_vm3 = vweird.f32 %v1719_v40 }
 0x871   :  { %v887_v5 = vsel %vm886_vm1, %v1717_v1, %v883_v33  ;;  %vm901_vm5 = vmor %vm899_vm4, %vm900_vm3 }
 0x872   :  { %v892_v6 = vsel %vm889_vm2, %v891_v50, %v887_v5  ;;  %v896_v8 = vsub.f32 1.0, %v895_v4 }
 0x873   :  { %v914_v10 = vmul.f32 %v912_v54, %v892_v6 }
 0x874   :  { %v897_v43 = vmul.f32 %v1719_v40, %v896_v8 }
 0x876   :  { %v898_v13 = vadd.f32 %v1719_v40, %v897_v43  ;;  %v1652_v43 = vld [vmem:[%s2226_s4 + $0xd8] sm:$0xff] }
 0x877   :  { %1109 = vmatpush.bf16.msrb.mxu2 %v1652_v43  ;;  %v1268_v43 = vld [vmem:[%s2228_s6 + $0x10] sm:$0xff] }
 0x878   :  { %v902_v15 = vsel %vm901_vm5, %v1719_v40, %v898_v13  ;;  %v1650_v13 = vld [vmem:[%s2226_s4 + $0xc8] sm:$0xff] }
 0x879   :  { %v907_v17 = vsel %vm904_vm6, %v906_v14, %v902_v15  ;;  %v1649_v14 = vld [vmem:[%s2226_s4 + $0xc0] sm:$0xff] }
 0x87a   :  { %v909_v18 = vmul.f32 2.0, %v907_v17 }
 0x87b   :  { %1110 = vmatpush.bf16.msrb.mxu2 %v1651_v11  ;;  %v1267_v11 = vld [vmem:[%s2228_s6 + $0x8] sm:$0xff] }
 0x87c   :  { %v1525_v19 = vadd.f32 -1.0, %v909_v18 }
 0x87e   :  { %v915_v20 = vmul.f32 %v1525_v19, %v892_v6 }
 0x87f   :  { %1111 = vmatpush.bf16.msrb.mxu2 %v1650_v13 }
 0x880   :  { %917 = vrot.lane.b32.xlu1 %v915_v20, %s1773_s2 }
 0x883   :  { %1112 = vmatpush.bf16.msrb.mxu2 %v1649_v14  ;;  %v1266_v14 = vld [vmem:[%s2228_s6] sm:$0xff] }
 0x8f2   :  { %v918_v25 = vpop.permute.xlu1 %917 }
 0x8f3   :  { %v2139_v26 = vadd.f32 %v918_v25, %v914_v10 }
 0x8f5   :  { %1720 = vtanh.f32 %v2139_v26  ;;  %v1053_v40 = vrot.slane %v2139_v26, 6 }
 0x8fb   :  { %v1721_v28 = vpop.eup %1720 }
 0x8fc   :  { %v922_v29 = vmul.f32 %v1721_v28, %v907_v17 }
 0x8fe   :  { %v923_v31 = vpack.c.bf16 %v922_v29, %v922_v29 }
 0x900   :  { %v934_v32 = vrot.slane %v923_v31, 1 }
 0x902   :  { %935 = vrot.lane.b32.xlu2 %v934_v32, %s1773_s2 }
 0x95c   :  { %v936_v37 = vpop.permute.xlu2 %935 }
 0x95d   :  { %1550 = vmatmul.msk.bf16.vlgmr.msra.gmra.mxu3 %vm148_vm9, %v936_v37  ;;  %1551 = vmatmul.msk.bf16.vlgmr.msrb.gmra.mxu0 %vm148_vm9, %v936_v37 }
 0x95e   :  { %1552 = vmatmul.msk.bf16.vlgmr.msrb.gmra.mxu1 %vm148_vm9, %v936_v37 }
 0x9da   :  { %v987_v3 = vpop.f32.mrf.mxu0 }
 0x9db   :  { %v1006_v41 = vrot.slane %v987_v3, 4  ;;  %v1000_v12 = vpop.f32.mrf.mxu1 }
 0x9dc   :  { %v1007_v42 = vrot.slane %v1000_v12, 4 }
 0x9dd   :  { %v1010_v27 = vadd.f32 %v1006_v41, %v2085_v56 }
 0x9de   :  { %v1011_v45 = vadd.f32 %v1007_v42, %v2090_v57 }
 0x9df   :  { %v1553_v35 = vmul.f32 -1.442695, %v1010_v27 }
 0x9e0   :  { %v1554_v46 = vmul.f32 -1.442695, %v1011_v45  ;;  %v973_v47 = vpop.f32.mrf.mxu3 }
 0x9e1   :  { %1722 = vpow2.f32 %v1553_v35  ;;  %v2152_v48 = vadd.f32 %v973_v47, %v2121_v51 }
 0x9e2   :  { %1724 = vpow2.f32 %v1554_v46  ;;  %v989_v49 = vpop.f32.mrf.mxu0 }
 0x9e3   :  { %v1002_v52 = vpop.f32.mrf.mxu1 }
 0x9e7   :  { %v1723_v53 = vpop.eup %1722 }
 0x9e8   :  { %v1725_v59 = vpop.eup %1724  ;;  %v1018_v60 = vadd.f32 1.0, %v1723_v53  ;;  %v975_v61 = vpop.f32.mrf.mxu3 }
 0x9e9   :  { %v1019_v62 = vadd.f32 1.0, %v1725_v59 }
 0x9ea   :  { %1726 = vrcp.f32 %v1018_v60  ;;  %v1031_v36 = vand.u32 2147483648, %v1018_v60  ;;  %v1029_v51 = vand.u32 2147483647, %v1018_v60  ;;  %vm1025_vm10 = vweird.f32 %v1018_v60 }
 0x9eb   :  { %1728 = vrcp.f32 %v1019_v62  ;;  %v1046_v1 = vand.u32 2147483648, %v1019_v62  ;;  %v1044_v39 = vand.u32 2147483647, %v1019_v62  ;;  %vm1040_vm12 = vweird.f32 %v1019_v62 }
 0x9ec   :  { %v1032_v44 = vor.u32 1.1754944e-38, %v1031_v36  ;;  %vm1030_vm13 = vcmp.eq.f32.partialorder %v1029_v51, 8.507059e+37 }
 0x9ed   :  { %v1047_v4 = vor.u32 1.1754944e-38, %v1046_v1  ;;  %vm1045_vm15 = vcmp.eq.f32.partialorder %v1044_v39, 8.507059e+37 }
 0x9f0   :  { %v1727_v7 = vpop.eup %1726 }
 0x9f1   :  { %v1729_v16 = vpop.eup %1728  ;;  %v1021_v63 = vmul.f32 %v1727_v7, %v1018_v60  ;;  %vm1026_vm7 = vweird.f32 %v1727_v7 }
 0x9f2   :  { %v1036_v30 = vmul.f32 %v1729_v16, %v1019_v62  ;;  %vm1041_vm8 = vweird.f32 %v1729_v16  ;;  %vm1027_vm11 = vmor %vm1025_vm10, %vm1026_vm7 }
 0x9f3   :  { %v1022_v0 = vsub.f32 1.0, %v1021_v63  ;;  %vm1042_vm14 = vmor %vm1040_vm12, %vm1041_vm8 }
 0x9f4   :  { %v1037_v58 = vsub.f32 1.0, %v1036_v30 }
 0x9f5   :  { %v1023_v55 = vmul.f32 %v1727_v7, %v1022_v0 }
 0x9f6   :  { %v1038_v2 = vmul.f32 %v1729_v16, %v1037_v58 }
 0x9f7   :  { %v1024_v34 = vadd.f32 %v1727_v7, %v1023_v55 }
 0x9f8   :  { %v1039_v38 = vadd.f32 %v1729_v16, %v1038_v2 }
 0x9f9   :  { %v1028_v33 = vsel %vm1027_vm11, %v1727_v7, %v1024_v34 }
 0x9fa   :  { %v1033_v50 = vsel %vm1030_vm13, %v1032_v44, %v1028_v33  ;;  %v1043_v54 = vsel %vm1042_vm14, %v1729_v16, %v1039_v38  ;;  %v1656_v38 = vld [vmem:[%s2226_s4 + $0xf8] sm:$0xff]  ;;  %v1654_v33 = vld [vmem:[%s2226_s4 + $0xe8] sm:$0xff] }
 0x9fb   :  { %v1048_v5 = vsel %vm1045_vm15, %v1047_v4, %v1043_v54  ;;  %v1055_v6 = vmul.f32 %v1053_v40, %v1033_v50  ;;  %1250 = vmatpush.bf16.msra.mxu1 %v1656_v38  ;;  %v1655_v40 = vld [vmem:[%s2226_s4 + $0xf0] sm:$0xff]  ;;  %v1653_v4 = vld [vmem:[%s2226_s4 + $0xe0] sm:$0xff] }
 0x9fc   :  { %v1050_v8 = vmul.f32 2.0, %v1048_v5 }
 0x9fe   :  { %v1555_v9 = vadd.f32 -1.0, %v1050_v8 }
 0x9ff   :  { %1251 = vmatpush.bf16.msra.mxu1 %v1655_v40 }
 0xa00   :  { %v1056_v10 = vmul.f32 %v1555_v9, %v1033_v50 }
 0xa02   :  { %1058 = vrot.lane.b32.xlu0 %v1056_v10, %s1773_s2  ;;  %v1269_v10 = vld [vmem:[%s2228_s6 + $0x18] sm:$0xff] }
 0xa03   :  { %1252 = vmatpush.bf16.msra.mxu1 %v1654_v33  ;;  %1289 = vmatpush.msra.mxu2 %v1269_v10 }
 0xa05   :  { %1290 = vmatpush.msra.mxu2 %v1268_v43 }
 0xa07   :  { %1253 = vmatpush.bf16.msra.mxu1 %v1653_v4  ;;  %1291 = vmatpush.msra.mxu2 %v1267_v11 }
 0xa09   :  { %1292 = vmatpush.msra.mxu2 %v1266_v14 }
 0xa74   :  { %v1059_v15 = vpop.permute.xlu0 %1058 }
 0xa75   :  { %v2168_v17 = vadd.f32 %v1059_v15, %v1055_v6  ;;  %v1660_v15 = vld [vmem:[%s2227_s5] ss:$0 sm:$0xff]  ;;  %s1774_s5 = smov [#allocation2]  }
 0xa76   :  { %s1316_s6 = sshll.u32 %s1774_s5, 4  ;;  %s1317_s6 = int_to_ptr.vmem [resolvable:$true] %s1316_s6 }
 0xa77   :  { %1730 = vtanh.f32 %v2168_v17  ;;  %v1194_v51 = vrot.slane %v2168_v17, 6 }
 0xa7d   :  { %v1731_v18 = vpop.eup %1730 }
 0xa7e   :  { %v1063_v19 = vmul.f32 %v1731_v18, %v1048_v5 }
 0xa80   :  { %v1064_v20 = vpack.c.bf16 %v1063_v19, %v1063_v19 }
 0xa82   :  { %v1075_v21 = vrot.slane %v1064_v20, 2 }
 0xa84   :  { %1076 = vrot.lane.b32.xlu1 %v1075_v21, %s1773_s2 }
 0xaf6   :  { %v1077_v22 = vpop.permute.xlu1 %1076 }
 0xaf7   :  { %1580 = vmatmul.msk.bf16.vlgmr.msrb.gmra.mxu2 %vm148_vm9, %v1077_v22  ;;  %1581 = vmatmul.msk.bf16.vlgmr.msrb.gmra.mxu3 %vm148_vm9, %v1077_v22 }
 0xaf8   :  { %1582 = vmatmul.msk.bf16.vlgmr.msra.gmra.mxu0 %vm148_vm9, %v1077_v22  ;;  %v1661_v22 = vld [vmem:[%s2229_s7] ss:$0 sm:$0xff] }
 0xb75   :  { %v1141_v23 = vpop.f32.mrf.mxu0 }
 0xb76   :  { %v1148_v24 = vrot.slane %v1141_v23, 2 }
 0xb78   :  { %v1152_v25 = vadd.f32 %v1148_v24, %v2090_v57 }
 0xb7a   :  { %v1584_v26 = vmul.f32 -1.442695, %v1152_v25  ;;  %v1114_v28 = vpop.f32.mrf.mxu2  ;;  %v1128_v29 = vpop.f32.mrf.mxu3 }
 0xb7b   :  { %v2177_v31 = vadd.f32 %v1114_v28, %v2152_v48  ;;  %v1147_v32 = vrot.slane %v1128_v29, 2 }
 0xb7c   :  { %1732 = vpow2.f32 %v1584_v26 }
 0xb7d   :  { %v1151_v37 = vadd.f32 %v1147_v32, %v2085_v56  ;;  %v1143_v3 = vpop.f32.mrf.mxu0 }
 0xb7f   :  { %v1583_v41 = vmul.f32 -1.442695, %v1151_v37 }
 0xb81   :  { %1734 = vpow2.f32 %v1583_v41 }
 0xb82   :  { %v1733_v12 = vpop.eup %1732  ;;  %v1116_v42 = vpop.f32.mrf.mxu2 }
 0xb83   :  { %v1130_v27 = vpop.f32.mrf.mxu3  ;;  %v1160_v45 = vadd.f32 1.0, %v1733_v12 }
 0xb85   :  { %1736 = vrcp.f32 %v1160_v45  ;;  %v1187_v48 = vand.u32 2147483648, %v1160_v45  ;;  %v1185_v59 = vand.u32 2147483647, %v1160_v45  ;;  %vm1181_vm2 = vweird.f32 %v1160_v45 }
 0xb87   :  { %v1735_v35 = vpop.eup %1734  ;;  %v1188_v62 = vor.u32 1.1754944e-38, %v1187_v48  ;;  %vm1186_vm4 = vcmp.eq.f32.partialorder %v1185_v59, 8.507059e+37 }
 0xb88   :  { %v1159_v57 = vadd.f32 1.0, %v1735_v35 }
 0xb8a   :  { %1738 = vrcp.f32 %v1159_v57  ;;  %v1172_v7 = vand.u32 2147483648, %v1159_v57  ;;  %v1170_v30 = vand.u32 2147483647, %v1159_v57  ;;  %vm1166_vm6 = vweird.f32 %v1159_v57 }
 0xb8b   :  { %v1737_v46 = vpop.eup %1736 }
 0xb8c   :  { %v1177_v47 = vmul.f32 %v1737_v46, %v1160_v45  ;;  %vm1182_vm1 = vweird.f32 %v1737_v46  ;;  %v1173_v55 = vor.u32 1.1754944e-38, %v1172_v7  ;;  %vm1171_vm8 = vcmp.eq.f32.partialorder %v1170_v30, 8.507059e+37 }
 0xb8d   :  { %vm1183_vm3 = vmor %vm1181_vm2, %vm1182_vm1 }
 0xb8e   :  { %v1178_v49 = vsub.f32 1.0, %v1177_v47 }
 0xb90   :  { %v1739_v52 = vpop.eup %1738  ;;  %v1179_v53 = vmul.f32 %v1737_v46, %v1178_v49 }
 0xb91   :  { %v1162_v56 = vmul.f32 %v1739_v52, %v1159_v57  ;;  %vm1167_vm5 = vweird.f32 %v1739_v52 }
 0xb92   :  { %v1180_v60 = vadd.f32 %v1737_v46, %v1179_v53  ;;  %vm1168_vm7 = vmor %vm1166_vm6, %vm1167_vm5 }
 0xb93   :  { %v1163_v61 = vsub.f32 1.0, %v1162_v56 }
 0xb94   :  { %v1184_v16 = vsel %vm1183_vm3, %v1737_v46, %v1180_v60 }
 0xb95   :  { %v1164_v63 = vmul.f32 %v1739_v52, %v1163_v61  ;;  %v1189_v0 = vsel %vm1186_vm4, %v1188_v62, %v1184_v16 }
 0xb96   :  { %v1191_v36 = vmul.f32 2.0, %v1189_v0 }
 0xb97   :  { %v1165_v58 = vadd.f32 %v1739_v52, %v1164_v63 }
 0xb98   :  { %v1585_v2 = vadd.f32 -1.0, %v1191_v36 }
 0xb99   :  { %v1169_v1 = vsel %vm1168_vm7, %v1739_v52, %v1165_v58 }
 0xb9a   :  { %v1174_v39 = vsel %vm1171_vm8, %v1173_v55, %v1169_v1 }
 0xb9b   :  { %v1197_v34 = vmul.f32 %v1585_v2, %v1174_v39  ;;  %v1196_v44 = vmul.f32 %v1194_v51, %v1174_v39 }
 0xb9d   :  { %1199 = vrot.lane.b32.xlu2 %v1197_v34, %s1773_s2 }
 0xbf7   :  { %v1200_v50 = vpop.permute.xlu2 %1199 }
 0xbf8   :  { %v1202_v54 = vadd.f32 %v1200_v50, %v1196_v44 }
 0xbfa   :  { %1740 = vtanh.f32 %v1202_v54 }
 0xc00   :  { %v1741_v5 = vpop.eup %1740 }
 0xc01   :  { %v1204_v6 = vmul.f32 %v1741_v5, %v1189_v0 }
 0xc03   :  { %v1205_v8 = vpack.c.bf16 %v1204_v6, %v1204_v6 }
 0xc05   :  { %v1216_v9 = vrot.slane %v1205_v8, 3 }
 0xc07   :  { %1217 = vrot.lane.b32.xlu0 %v1216_v9, %s1773_s2 }
 0xc79   :  { %v1218_v13 = vpop.permute.xlu0 %1217 }
 0xc7a   :  { %1610 = vmatmul.msk.bf16.vlgmr.msra.gmra.mxu1 %vm148_vm9, %v1218_v13  ;;  %vm1297_vm9 = vcmask 9216  }
 0xcf7   :  { %v1255_v17 = vpop.f32.mrf.mxu1 }
 0xcf8   :  { %v1259_v18 = vadd.f32 %v1255_v17, %v2177_v31 }
 0xcfa   :  { %v1264_v19 = vadd.f32 %v1660_v15, %v1259_v18 }
 0xcfc   :  { %v1265_v20 = vmax.f32 %v1264_v19, 0.0 }
 0xcfe   :  { %1611 = vmatmul.msk.f32.vlgmr.msra.gmra.mxu2 %vm76_vm0, %v1265_v20 }
 0xcff   :  { %v1257_v21 = vpop.f32.mrf.mxu1 }
 0xd81   :  { %v1294_v23 = vpop.f32.mrf.mxu2 }
 0xd82   :  { %v1295_v24 = vadd.f32 %v1661_v22, %v1294_v23 }
 0xd84   :  { %v1298_v25 = vsel %vm1297_vm9, %v1295_v24, -inf }
 0xd85   :  { %1299 = vmax.xlane.f32.xlu1 %v1298_v25 }
 0xdf8   :  { %v1300_v26 = vpop.xlane.xlu1 %1299 }
 0xdf9   :  { %v1301_v28 = vsub.f32 %v1295_v24, %v1300_v26 }
 0xdfb   :  { %v1302_v29 = vmul.f32 1.442695, %v1301_v28 }
 0xdfd   :  { %1742 = vpow2.f32 %v1302_v29 }
 0xe03   :  { %v1743_v31 = vpop.eup %1742 }
 0xe04   :  { %v1304_v32 = vsel %vm1297_vm9, %v1743_v31, 0.0 }
 0xe05   :  { %1305 = vadd.xlane.f32.xlu2 %v1304_v32 }
 0xe78   :  { %v1306_v37 = vpop.xlane.xlu2 %1305 }
 0xe79   :  { %1744 = vlog2.f32 %v1306_v37 }
 0xe7f   :  { %v1745_v3 = vpop.eup %1744 }
 0xe80   :  { %v1308_v41 = vmul.f32 0.6931472, %v1745_v3 }
 0xe82   :  { %v1309_v12 = vsub.f32 %v1301_v28, %v1308_v41 }
 0xe84   :  { %1310 = vst.msk [vmem:[#allocation2] sm:$0x3] %vm1297_vm9, %v1309_v12 }
 0xe85   :  { %1321 = dma.vmem_to_hbm [thread:$0]  %s1317_s6, 32, %s1319_s10, [#allocation3]  }
 0xe86   :  { %1770 = dma.done.wait [#allocation3], 32  }
 0xe87   :  { %1771 = vsyncadd [#allocation3], 4294967264 }
 0xe88   :  { %1326 = vsyncpa [#allocation3], 1 }

</bundles_post_ra>
